<compile_context>
chip_gen: v7x
topology: tpu7x:2x2x1
jax: 0.10.0
libtpu: 0.0.40
codegen_flags: <defaults>
</compile_context>

<pallas_src>
import functools

import jax
import jax.numpy as jnp
import numpy as np
from jax import lax
from jax.experimental import pallas as pl
from jax.experimental.pallas import tpu as pltpu

C1 = 10          # conv1 out channels
C2 = 20          # conv2 out channels
F1P = 128        # fc1 output padded 50 -> 128 (lane dense)
OUTP = 128       # fc2 output padded 10 -> 128 (lane dense)
NEG = -1e30      # "minus infinity" bias for the padded class lanes


# --------------------------------- kernel -----------------------------------
def net_post_kernel(x_ref, w1b_ref, b1t_ref, w2b_ref, maskb_ref, biasm_ref,
                    fc1w_ref, fc1b_ref, fc2w_ref, fc2b_ref, out_ref):
    tb = x_ref.shape[0]

    # ---- conv1 + maxpool + relu, fully lane-dense --------------------------
    # lhs rows = (n, pooled_row r); lanes of y1 = quadrant*128 + pooled_col*10 + cout
    lhs1 = x_ref[...].reshape(tb * 12, 6 * 28)              # bf16, leading-dim merge
    y1 = jnp.dot(lhs1, w1b_ref[...],
                 preferred_element_type=jnp.float32) + b1t_ref[...]   # (tb*12, 512)
    # 2x2 max-pool == max over the 4 aligned 128-lane quadrants; then relu.
    h1 = jnp.maximum(jnp.maximum(y1[:, 0:128], y1[:, 128:256]),
                     jnp.maximum(y1[:, 256:384], y1[:, 384:512]))
    h1 = jnp.maximum(h1, 0.0).reshape(tb, 12, 128)          # lanes = col*10 + cin

    # ---- conv2 as 5 banded matmuls, f32 accumulation ------------------------
    # output lanes = w_parity*128 + pooled_col*20 + cout  (80 used lanes / half)
    h1b = h1.astype(jnp.bfloat16)
    acc2 = jnp.dot(h1b[:, 0:8, :].reshape(tb * 8, 128), w2b_ref[0],
                   preferred_element_type=jnp.float32)
    for ki in range(1, 5):
        lhs = h1b[:, ki:ki + 8, :].reshape(tb * 8, 128)
        acc2 = acc2 + jnp.dot(lhs, w2b_ref[ki], preferred_element_type=jnp.float32)
    # (conv2 + bias) * mask  ==  acc2*mask + bias*mask  (folded in prepare_params)
    y2 = acc2.reshape(tb, 8, 256) * maskb_ref[...] + biasm_ref[...]
    # TODO(synk): nn.Dropout2d / F.dropout are identity in eval mode; train-mode
    # stochastic masking is not reproduced here.
    g = jnp.maximum(y2[..., :128], y2[..., 128:])           # W-pool (aligned halves)
    g = g.reshape(tb, 4, 2, 128)
    h2 = jnp.maximum(jnp.maximum(g[:, :, 0, :], g[:, :, 1, :]), 0.0)   # (tb,4,128)

    # ---- fc1 (4 accumulated 128x128 matmuls) -> relu ------------------------
    h2b = h2.astype(jnp.bfloat16)
    z1 = jnp.dot(h2b[:, 0, :], fc1w_ref[0], preferred_element_type=jnp.float32)
    for r in range(1, 4):
        z1 = z1 + jnp.dot(h2b[:, r, :], fc1w_ref[r],
                          preferred_element_type=jnp.float32)
    z1 = jnp.maximum(z1 + fc1b_ref[...], 0.0)               # (tb, 128); pad lanes = 0

    # ---- fc2 -> log_softmax (padded class lanes carry -1e30 bias) -----------
    z2 = jnp.dot(z1.astype(jnp.bfloat16), fc2w_ref[...],
                 preferred_element_type=jnp.float32) + fc2b_ref[...]   # (tb, 128)
    m = jnp.max(z2, axis=-1, keepdims=True)
    lse = jnp.log(jnp.sum(jnp.exp(z2 - m), axis=-1, keepdims=True)) + m
    out_ref[...] = z2 - lse


# --------------------- one-time parameter preprocessing ----------------------
def prepare_params(params):
    """PyTorch-convention params -> kernel-layout arrays (done once at load)."""
    w1, b1, w2, b2, mask, fc1_w, fc1_b, fc2_w, fc2_b = [
        np.asarray(p, np.float32) for p in params]

    # conv1 quadrant band:
    #   rows  = m*28 + input_col,  m = hp + ki in 0..5
    #   cols  = (2*hp + wp)*128 + pooled_col*10 + cout   (hp/wp = 2x2 pool quadrant)
    w1b = np.zeros((6 * 28, 4 * 128), np.float32)
    b1t = np.zeros((1, 4 * 128), np.float32)
    for hp in range(2):
        for wp in range(2):
            q = 2 * hp + wp
            for half in range(12):
                col0 = q * 128 + half * C1
                b1t[0, col0:col0 + C1] = b1
                ow = 2 * half + wp
                for ki in range(5):
                    for kj in range(5):
                        w1b[(hp + ki) * 28 + ow + kj, col0:col0 + C1] = w1[:, 0, ki, kj]

    # conv2 band (per ki): rows = in_col*10 + cin, cols = wp*128 + pooled_col*20 + c2
    # bias and prune mask are folded: kernel computes  acc*maskb + biasm
    w2b = np.zeros((5, 128, 2 * 128), np.float32)
    maskb = np.zeros((8, 2 * 128), np.float32)
    biasm = np.zeros((8, 2 * 128), np.float32)
    for wp in range(2):
        for half in range(4):
            ow = 2 * half + wp
            c0 = wp * 128 + half * C2
            for ki in range(5):
                for kj in range(5):
                    w2b[ki, (ow + kj) * C1:(ow + kj + 1) * C1, c0:c0 + C2] = \
                        w2[:, :, ki, kj].T                      # (cin, c2)
            for oh in range(8):
                maskb[oh, c0:c0 + C2] = mask[:, oh, ow]
                biasm[oh, c0:c0 + C2] = b2 * mask[:, oh, ow]

    # fc1: kernel features are rows (n, oh_pool) x lanes (ow_pool*20 + c2);
    # PyTorch flatten of (N,20,4,4) is c2*16 + oh_pool*4 + ow_pool.  Pad 50->128.
    fc1w = np.zeros((4, 128, F1P), np.float32)
    for r in range(4):
        for owp in range(4):
            for c2 in range(C2):
                fc1w[r, owp * C2 + c2, :50] = fc1_w[:, c2 * 16 + r * 4 + owp]
    fc1b = np.zeros((1, F1P), np.float32)
    fc1b[0, :50] = fc1_b

    # fc2: pad K 50->128 and classes 10->128 (padded classes get -1e30 bias)
    fc2w = np.zeros((F1P, OUTP), np.float32)
    fc2w[:50, :10] = fc2_w.T
    fc2b = np.full((1, OUTP), NEG, np.float32)
    fc2b[0, :10] = fc2_b

    return (jnp.asarray(w1b, jnp.bfloat16), jnp.asarray(b1t),
            jnp.asarray(w2b, jnp.bfloat16),
            jnp.asarray(maskb), jnp.asarray(biasm),
            jnp.asarray(fc1w, jnp.bfloat16), jnp.asarray(fc1b),
            jnp.asarray(fc2w, jnp.bfloat16), jnp.asarray(fc2b))


# -------------------------------- wrapper ------------------------------------
def _round_up(x, m):
    return (x + m - 1) // m * m


@functools.partial(jax.jit, static_argnames=("batch_tile",))
def net_post_forward(x_nchw, prep, batch_tile=128):
    """x_nchw: (N, 1, 28, 28) f32 -> (N, 10) log-probabilities."""
    n = x_nchw.shape[0]
    tb = max(8, (int(batch_tile) // 8) * 8)
    tb = min(tb, _round_up(n, 8))
    n_pad = _round_up(n, tb)

    # Build the conv1 banded lhs in XLA (hoisted out of the kernel) as bf16:
    # lhs1[n, r, m*28 + c] = x[n, 2*r + m, c],   r in 0..11, m in 0..5.
    xb = x_nchw[:, 0, :, :].astype(jnp.bfloat16)            # (N, 28, 28)
    lhs1 = jnp.concatenate([xb[:, m:m + 23:2, :] for m in range(6)], axis=2)
    if n_pad != n:
        lhs1 = jnp.pad(lhs1, ((0, n_pad - n), (0, 0), (0, 0)))

    w1b, b1t, w2b, maskb, biasm, fc1w, fc1b, fc2w, fc2b = prep

    cost = pl.CostEstimate(
        flops=int(n_pad) * 4_900_000,
        transcendentals=int(n_pad) * 130,
        bytes_accessed=int(n_pad) * (12 * 168 * 2 + OUTP * 4) + 1_000_000,
    )

    out = pl.pallas_call(
        net_post_kernel,
        out_shape=jax.ShapeDtypeStruct((n_pad, OUTP), jnp.float32),
        grid_spec=pltpu.PrefetchScalarGridSpec(
            num_scalar_prefetch=0,
            grid=(n_pad // tb,),
            in_specs=[
                pl.BlockSpec((tb, 12, 6 * 28), lambda b: (b, 0, 0)),   # conv1 lhs
                pl.BlockSpec((6 * 28, 4 * 128), lambda b: (0, 0)),     # w1 band
                pl.BlockSpec((1, 4 * 128), lambda b: (0, 0)),          # b1 tiled
                pl.BlockSpec((5, 128, 2 * 128), lambda b: (0, 0, 0)),  # w2 bands
                pl.BlockSpec((8, 2 * 128), lambda b: (0, 0)),          # prune mask
                pl.BlockSpec((8, 2 * 128), lambda b: (0, 0)),          # b2 * mask
                pl.BlockSpec((4, 128, F1P), lambda b: (0, 0, 0)),      # fc1 w
                pl.BlockSpec((1, F1P), lambda b: (0, 0)),              # fc1 b
                pl.BlockSpec((F1P, OUTP), lambda b: (0, 0)),           # fc2 w
                pl.BlockSpec((1, OUTP), lambda b: (0, 0)),             # fc2 b
            ],
            out_specs=pl.BlockSpec((tb, OUTP), lambda b: (b, 0)),
        ),
        compiler_params=pltpu.CompilerParams(
            dimension_semantics=("parallel",),
            vmem_limit_bytes=32 * 1024 * 1024,   # safe on v7x (64 MiB) as well
        ),
        cost_estimate=cost,
    )(lhs1, w1b, b1t, w2b, maskb, biasm, fc1w, fc1b, fc2w, fc2b)

    return out[:n, :10]


# ----------------------------- pure-JAX reference ----------------------------
def ref_forward(x, params):
    w1, b1, w2, b2, mask, fc1_w, fc1_b, fc2_w, fc2_b = params
    dn = ('NCHW', 'OIHW', 'NCHW')

    def pool(h):
        nn_, c, hh, ww = h.shape
        return h.reshape(nn_, c, hh // 2, 2, ww // 2, 2).max(axis=(3, 5))

    h = lax.conv_general_dilated(x, w1, (1, 1), 'VALID', dimension_numbers=dn,
                                 precision=lax.Precision.HIGHEST)
    h = h + b1[None, :, None, None]
    h = jnp.maximum(pool(h), 0.0)
    h = lax.conv_general_dilated(h, w2, (1, 1), 'VALID', dimension_numbers=dn,
                                 precision=lax.Precision.HIGHEST)
    h = h + b2[None, :, None, None]
    h = h * mask[None]
    h = jnp.maximum(pool(h), 0.0)
    h = h.reshape(-1, 320)
    h = jnp.maximum(h @ fc1_w.T + fc1_b, 0.0)
    h = h @ fc2_w.T + fc2_b
    return jax.nn.log_softmax(h, axis=-1)


# ----------------------------------- main ------------------------------------
if __name__ == "__main__":
    key = jax.random.PRNGKey(0)
    ks = jax.random.split(key, 10)

    N = 2
    x = jax.random.normal(ks[0], (N, 1, 28, 28), jnp.float32)

    # Deterministic synthetic parameters (shapes from the module's __init__).
    w1 = 0.1 * jax.random.normal(ks[1], (10, 1, 5, 5), jnp.float32)
    b1 = 0.1 * jax.random.normal(ks[2], (10,), jnp.float32)
    w2 = 0.1 * jax.random.normal(ks[3], (20, 10, 5, 5), jnp.float32)
    b2 = 0.1 * jax.random.normal(ks[4], (20,), jnp.float32)
    prune_mask = jax.random.bernoulli(ks[5], 0.7, (20, 8, 8)).astype(jnp.float32)
    fc1_w = 0.1 * jax.random.normal(ks[6], (50, 320), jnp.float32)
    fc1_b = 0.1 * jax.random.normal(ks[7], (50,), jnp.float32)
    fc2_w = 0.1 * jax.random.normal(ks[8], (10, 50), jnp.float32)
    fc2_b = 0.1 * jax.random.normal(ks[9], (10,), jnp.float32)

    params = (w1, b1, w2, b2, prune_mask, fc1_w, fc1_b, fc2_w, fc2_b)

    prep = prepare_params(params)           # one-time layout preprocessing
    out = net_post_forward(x, prep)
    out = jax.block_until_ready(out)

    ref = ref_forward(x, params)
    np.testing.assert_allclose(np.asarray(out), np.asarray(ref),
                               rtol=3e-2, atol=3e-2)

    assert out.shape == (N, 10)
    print("KERNEL_OK")
</pallas_src>

<mosaic_0001>
module attributes {stable_mosaic.version = 11 : i64} {
  func.func @net_post_kernel(%arg0: i32, %arg1: memref<8x12x168xbf16, #tpu.memory_space<vmem>>, %arg2: memref<168x512xbf16, #tpu.memory_space<vmem>>, %arg3: memref<1x512xf32, #tpu.memory_space<vmem>>, %arg4: memref<5x128x256xbf16, #tpu.memory_space<vmem>>, %arg5: memref<8x256xf32, #tpu.memory_space<vmem>>, %arg6: memref<8x256xf32, #tpu.memory_space<vmem>>, %arg7: memref<4x128x128xbf16, #tpu.memory_space<vmem>>, %arg8: memref<1x128xf32, #tpu.memory_space<vmem>>, %arg9: memref<128x128xbf16, #tpu.memory_space<vmem>>, %arg10: memref<1x128xf32, #tpu.memory_space<vmem>>, %arg11: memref<8x128xf32, #tpu.memory_space<vmem>>) attributes {dimension_semantics = [#tpu.dimension_semantics<parallel>], iteration_bounds = array<i64: 1>, scalar_prefetch = 0 : i64, scratch_operands = 0 : i64, tpu.core_type = #tpu.core_type<tc>, window_params = [{transform_indices = @transform_0, window_bounds = array<i64: 8, 12, 168>}, {pipeline_mode = #tpu.pipeline_mode<synchronous>, transform_indices = @transform_1, window_bounds = array<i64: 168, 512>}, {pipeline_mode = #tpu.pipeline_mode<synchronous>, transform_indices = @transform_2, window_bounds = array<i64: 1, 512>}, {pipeline_mode = #tpu.pipeline_mode<synchronous>, transform_indices = @transform_3, window_bounds = array<i64: 5, 128, 256>}, {pipeline_mode = #tpu.pipeline_mode<synchronous>, transform_indices = @transform_4, window_bounds = array<i64: 8, 256>}, {pipeline_mode = #tpu.pipeline_mode<synchronous>, transform_indices = @transform_5, window_bounds = array<i64: 8, 256>}, {pipeline_mode = #tpu.pipeline_mode<synchronous>, transform_indices = @transform_6, window_bounds = array<i64: 4, 128, 128>}, {pipeline_mode = #tpu.pipeline_mode<synchronous>, transform_indices = @transform_7, window_bounds = array<i64: 1, 128>}, {pipeline_mode = #tpu.pipeline_mode<synchronous>, transform_indices = @transform_8, window_bounds = array<i64: 128, 128>}, {pipeline_mode = #tpu.pipeline_mode<synchronous>, transform_indices = @transform_9, window_bounds = array<i64: 1, 128>}, {transform_indices = @transform_10, window_bounds = array<i64: 8, 128>}]} {
    %c0 = arith.constant 0 : index
    %c0_0 = arith.constant 0 : index
    %c0_1 = arith.constant 0 : index
    %0 = vector.load %arg1[%c0, %c0_0, %c0_1] : memref<8x12x168xbf16, #tpu.memory_space<vmem>>, vector<8x12x168xbf16>
    %1 = vector.shape_cast %0 : vector<8x12x168xbf16> to vector<96x168xbf16>
    %c0_2 = arith.constant 0 : index
    %c0_3 = arith.constant 0 : index
    %2 = vector.load %arg2[%c0_2, %c0_3] : memref<168x512xbf16, #tpu.memory_space<vmem>>, vector<168x512xbf16>
    %cst = arith.constant dense<0.000000e+00> : vector<96x512xf32>
    %3 = tpu.matmul %1, %2, %cst {dimension_numbers = #tpu.dot_dimension_numbers<[1], [0], [0], [1], [0, 0, 1, 1], [], []>} : vector<96x168xbf16>, vector<168x512xbf16>, vector<96x512xf32> -> vector<96x512xf32>
    %c0_4 = arith.constant 0 : index
    %c0_5 = arith.constant 0 : index
    %4 = vector.load %arg3[%c0_4, %c0_5] : memref<1x512xf32, #tpu.memory_space<vmem>>, vector<1x512xf32>
    %5 = vector.broadcast %4 : vector<1x512xf32> to vector<96x512xf32>
    %6 = arith.addf %3, %5 : vector<96x512xf32>
    %7 = vector.extract_strided_slice %6 {offsets = [0, 0], sizes = [96, 128], strides = [1, 1]} : vector<96x512xf32> to vector<96x128xf32>
    %8 = vector.extract_strided_slice %6 {offsets = [0, 128], sizes = [96, 128], strides = [1, 1]} : vector<96x512xf32> to vector<96x128xf32>
    %9 = arith.maximumf %7, %8 : vector<96x128xf32>
    %10 = vector.extract_strided_slice %6 {offsets = [0, 256], sizes = [96, 128], strides = [1, 1]} : vector<96x512xf32> to vector<96x128xf32>
    %11 = vector.extract_strided_slice %6 {offsets = [0, 384], sizes = [96, 128], strides = [1, 1]} : vector<96x512xf32> to vector<96x128xf32>
    %12 = arith.maximumf %10, %11 : vector<96x128xf32>
    %13 = arith.maximumf %9, %12 : vector<96x128xf32>
    %cst_6 = arith.constant 0.000000e+00 : f32
    %14 = vector.broadcast %cst_6 : f32 to vector<96x128xf32>
    %15 = arith.maximumf %13, %14 : vector<96x128xf32>
    %16 = vector.shape_cast %15 : vector<96x128xf32> to vector<8x12x128xf32>
    %17 = arith.truncf %16 : vector<8x12x128xf32> to vector<8x12x128xbf16>
    %18 = vector.extract_strided_slice %17 {offsets = [0, 0, 0], sizes = [8, 8, 128], strides = [1, 1, 1]} : vector<8x12x128xbf16> to vector<8x8x128xbf16>
    %19 = vector.shape_cast %18 : vector<8x8x128xbf16> to vector<64x128xbf16>
    %c0_7 = arith.constant 0 : index
    %c0_8 = arith.constant 0 : index
    %c0_9 = arith.constant 0 : index
    %20 = vector.load %arg4[%c0_7, %c0_8, %c0_9] : memref<5x128x256xbf16, #tpu.memory_space<vmem>>, vector<1x128x256xbf16>
    %21 = vector.shape_cast %20 : vector<1x128x256xbf16> to vector<128x256xbf16>
    %cst_10 = arith.constant dense<0.000000e+00> : vector<64x256xf32>
    %22 = tpu.matmul %19, %21, %cst_10 {dimension_numbers = #tpu.dot_dimension_numbers<[1], [0], [0], [1], [0, 0, 1, 1], [], []>} : vector<64x128xbf16>, vector<128x256xbf16>, vector<64x256xf32> -> vector<64x256xf32>
    %23 = vector.extract_strided_slice %17 {offsets = [0, 1, 0], sizes = [8, 8, 128], strides = [1, 1, 1]} : vector<8x12x128xbf16> to vector<8x8x128xbf16>
    %24 = vector.shape_cast %23 : vector<8x8x128xbf16> to vector<64x128xbf16>
    %c1 = arith.constant 1 : index
    %c0_11 = arith.constant 0 : index
    %c0_12 = arith.constant 0 : index
    %25 = vector.load %arg4[%c1, %c0_11, %c0_12] : memref<5x128x256xbf16, #tpu.memory_space<vmem>>, vector<1x128x256xbf16>
    %26 = vector.shape_cast %25 : vector<1x128x256xbf16> to vector<128x256xbf16>
    %cst_13 = arith.constant dense<0.000000e+00> : vector<64x256xf32>
    %27 = tpu.matmul %24, %26, %cst_13 {dimension_numbers = #tpu.dot_dimension_numbers<[1], [0], [0], [1], [0, 0, 1, 1], [], []>} : vector<64x128xbf16>, vector<128x256xbf16>, vector<64x256xf32> -> vector<64x256xf32>
    %28 = arith.addf %22, %27 : vector<64x256xf32>
    %29 = vector.extract_strided_slice %17 {offsets = [0, 2, 0], sizes = [8, 8, 128], strides = [1, 1, 1]} : vector<8x12x128xbf16> to vector<8x8x128xbf16>
    %30 = vector.shape_cast %29 : vector<8x8x128xbf16> to vector<64x128xbf16>
    %c2 = arith.constant 2 : index
    %c0_14 = arith.constant 0 : index
    %c0_15 = arith.constant 0 : index
    %31 = vector.load %arg4[%c2, %c0_14, %c0_15] : memref<5x128x256xbf16, #tpu.memory_space<vmem>>, vector<1x128x256xbf16>
    %32 = vector.shape_cast %31 : vector<1x128x256xbf16> to vector<128x256xbf16>
    %cst_16 = arith.constant dense<0.000000e+00> : vector<64x256xf32>
    %33 = tpu.matmul %30, %32, %cst_16 {dimension_numbers = #tpu.dot_dimension_numbers<[1], [0], [0], [1], [0, 0, 1, 1], [], []>} : vector<64x128xbf16>, vector<128x256xbf16>, vector<64x256xf32> -> vector<64x256xf32>
    %34 = arith.addf %28, %33 : vector<64x256xf32>
    %35 = vector.extract_strided_slice %17 {offsets = [0, 3, 0], sizes = [8, 8, 128], strides = [1, 1, 1]} : vector<8x12x128xbf16> to vector<8x8x128xbf16>
    %36 = vector.shape_cast %35 : vector<8x8x128xbf16> to vector<64x128xbf16>
    %c3 = arith.constant 3 : index
    %c0_17 = arith.constant 0 : index
    %c0_18 = arith.constant 0 : index
    %37 = vector.load %arg4[%c3, %c0_17, %c0_18] : memref<5x128x256xbf16, #tpu.memory_space<vmem>>, vector<1x128x256xbf16>
    %38 = vector.shape_cast %37 : vector<1x128x256xbf16> to vector<128x256xbf16>
    %cst_19 = arith.constant dense<0.000000e+00> : vector<64x256xf32>
    %39 = tpu.matmul %36, %38, %cst_19 {dimension_numbers = #tpu.dot_dimension_numbers<[1], [0], [0], [1], [0, 0, 1, 1], [], []>} : vector<64x128xbf16>, vector<128x256xbf16>, vector<64x256xf32> -> vector<64x256xf32>
    %40 = arith.addf %34, %39 : vector<64x256xf32>
    %41 = vector.extract_strided_slice %17 {offsets = [0, 4, 0], sizes = [8, 8, 128], strides = [1, 1, 1]} : vector<8x12x128xbf16> to vector<8x8x128xbf16>
    %42 = vector.shape_cast %41 : vector<8x8x128xbf16> to vector<64x128xbf16>
    %c4 = arith.constant 4 : index
    %c0_20 = arith.constant 0 : index
    %c0_21 = arith.constant 0 : index
    %43 = vector.load %arg4[%c4, %c0_20, %c0_21] : memref<5x128x256xbf16, #tpu.memory_space<vmem>>, vector<1x128x256xbf16>
    %44 = vector.shape_cast %43 : vector<1x128x256xbf16> to vector<128x256xbf16>
    %cst_22 = arith.constant dense<0.000000e+00> : vector<64x256xf32>
    %45 = tpu.matmul %42, %44, %cst_22 {dimension_numbers = #tpu.dot_dimension_numbers<[1], [0], [0], [1], [0, 0, 1, 1], [], []>} : vector<64x128xbf16>, vector<128x256xbf16>, vector<64x256xf32> -> vector<64x256xf32>
    %46 = arith.addf %40, %45 : vector<64x256xf32>
    %47 = vector.shape_cast %46 : vector<64x256xf32> to vector<8x8x256xf32>
    %c0_23 = arith.constant 0 : index
    %c0_24 = arith.constant 0 : index
    %48 = vector.load %arg5[%c0_23, %c0_24] : memref<8x256xf32, #tpu.memory_space<vmem>>, vector<8x256xf32>
    %49 = vector.shape_cast %48 : vector<8x256xf32> to vector<1x8x256xf32>
    %50 = vector.broadcast %49 : vector<1x8x256xf32> to vector<8x8x256xf32>
    %51 = arith.mulf %47, %50 : vector<8x8x256xf32>
    %c0_25 = arith.constant 0 : index
    %c0_26 = arith.constant 0 : index
    %52 = vector.load %arg6[%c0_25, %c0_26] : memref<8x256xf32, #tpu.memory_space<vmem>>, vector<8x256xf32>
    %53 = vector.shape_cast %52 : vector<8x256xf32> to vector<1x8x256xf32>
    %54 = vector.broadcast %53 : vector<1x8x256xf32> to vector<8x8x256xf32>
    %55 = arith.addf %51, %54 : vector<8x8x256xf32>
    %56 = vector.extract_strided_slice %55 {offsets = [0, 0, 0], sizes = [8, 8, 128], strides = [1, 1, 1]} : vector<8x8x256xf32> to vector<8x8x128xf32>
    %57 = vector.extract_strided_slice %55 {offsets = [0, 0, 128], sizes = [8, 8, 128], strides = [1, 1, 1]} : vector<8x8x256xf32> to vector<8x8x128xf32>
    %58 = arith.maximumf %56, %57 : vector<8x8x128xf32>
    %59 = vector.shape_cast %58 : vector<8x8x128xf32> to vector<8x4x2x128xf32>
    %60 = vector.extract_strided_slice %59 {offsets = [0, 0, 0, 0], sizes = [8, 4, 1, 128], strides = [1, 1, 1, 1]} : vector<8x4x2x128xf32> to vector<8x4x1x128xf32>
    %61 = vector.shape_cast %60 : vector<8x4x1x128xf32> to vector<8x4x128xf32>
    %62 = vector.extract_strided_slice %59 {offsets = [0, 0, 1, 0], sizes = [8, 4, 1, 128], strides = [1, 1, 1, 1]} : vector<8x4x2x128xf32> to vector<8x4x1x128xf32>
    %63 = vector.shape_cast %62 : vector<8x4x1x128xf32> to vector<8x4x128xf32>
    %64 = arith.maximumf %61, %63 : vector<8x4x128xf32>
    %cst_27 = arith.constant 0.000000e+00 : f32
    %65 = vector.broadcast %cst_27 : f32 to vector<8x4x128xf32>
    %66 = arith.maximumf %64, %65 : vector<8x4x128xf32>
    %67 = arith.truncf %66 : vector<8x4x128xf32> to vector<8x4x128xbf16>
    %68 = vector.extract_strided_slice %67 {offsets = [0, 0, 0], sizes = [8, 1, 128], strides = [1, 1, 1]} : vector<8x4x128xbf16> to vector<8x1x128xbf16>
    %69 = vector.shape_cast %68 : vector<8x1x128xbf16> to vector<8x128xbf16>
    %c0_28 = arith.constant 0 : index
    %c0_29 = arith.constant 0 : index
    %c0_30 = arith.constant 0 : index
    %70 = vector.load %arg7[%c0_28, %c0_29, %c0_30] : memref<4x128x128xbf16, #tpu.memory_space<vmem>>, vector<1x128x128xbf16>
    %71 = vector.shape_cast %70 : vector<1x128x128xbf16> to vector<128x128xbf16>
    %cst_31 = arith.constant dense<0.000000e+00> : vector<8x128xf32>
    %72 = tpu.matmul %69, %71, %cst_31 {dimension_numbers = #tpu.dot_dimension_numbers<[1], [0], [0], [1], [0, 0, 1, 1], [], []>} : vector<8x128xbf16>, vector<128x128xbf16>, vector<8x128xf32> -> vector<8x128xf32>
    %73 = vector.extract_strided_slice %67 {offsets = [0, 1, 0], sizes = [8, 1, 128], strides = [1, 1, 1]} : vector<8x4x128xbf16> to vector<8x1x128xbf16>
    %74 = vector.shape_cast %73 : vector<8x1x128xbf16> to vector<8x128xbf16>
    %c1_32 = arith.constant 1 : index
    %c0_33 = arith.constant 0 : index
    %c0_34 = arith.constant 0 : index
    %75 = vector.load %arg7[%c1_32, %c0_33, %c0_34] : memref<4x128x128xbf16, #tpu.memory_space<vmem>>, vector<1x128x128xbf16>
    %76 = vector.shape_cast %75 : vector<1x128x128xbf16> to vector<128x128xbf16>
    %cst_35 = arith.constant dense<0.000000e+00> : vector<8x128xf32>
    %77 = tpu.matmul %74, %76, %cst_35 {dimension_numbers = #tpu.dot_dimension_numbers<[1], [0], [0], [1], [0, 0, 1, 1], [], []>} : vector<8x128xbf16>, vector<128x128xbf16>, vector<8x128xf32> -> vector<8x128xf32>
    %78 = arith.addf %72, %77 : vector<8x128xf32>
    %79 = vector.extract_strided_slice %67 {offsets = [0, 2, 0], sizes = [8, 1, 128], strides = [1, 1, 1]} : vector<8x4x128xbf16> to vector<8x1x128xbf16>
    %80 = vector.shape_cast %79 : vector<8x1x128xbf16> to vector<8x128xbf16>
    %c2_36 = arith.constant 2 : index
    %c0_37 = arith.constant 0 : index
    %c0_38 = arith.constant 0 : index
    %81 = vector.load %arg7[%c2_36, %c0_37, %c0_38] : memref<4x128x128xbf16, #tpu.memory_space<vmem>>, vector<1x128x128xbf16>
    %82 = vector.shape_cast %81 : vector<1x128x128xbf16> to vector<128x128xbf16>
    %cst_39 = arith.constant dense<0.000000e+00> : vector<8x128xf32>
    %83 = tpu.matmul %80, %82, %cst_39 {dimension_numbers = #tpu.dot_dimension_numbers<[1], [0], [0], [1], [0, 0, 1, 1], [], []>} : vector<8x128xbf16>, vector<128x128xbf16>, vector<8x128xf32> -> vector<8x128xf32>
    %84 = arith.addf %78, %83 : vector<8x128xf32>
    %85 = vector.extract_strided_slice %67 {offsets = [0, 3, 0], sizes = [8, 1, 128], strides = [1, 1, 1]} : vector<8x4x128xbf16> to vector<8x1x128xbf16>
    %86 = vector.shape_cast %85 : vector<8x1x128xbf16> to vector<8x128xbf16>
    %c3_40 = arith.constant 3 : index
    %c0_41 = arith.constant 0 : index
    %c0_42 = arith.constant 0 : index
    %87 = vector.load %arg7[%c3_40, %c0_41, %c0_42] : memref<4x128x128xbf16, #tpu.memory_space<vmem>>, vector<1x128x128xbf16>
    %88 = vector.shape_cast %87 : vector<1x128x128xbf16> to vector<128x128xbf16>
    %cst_43 = arith.constant dense<0.000000e+00> : vector<8x128xf32>
    %89 = tpu.matmul %86, %88, %cst_43 {dimension_numbers = #tpu.dot_dimension_numbers<[1], [0], [0], [1], [0, 0, 1, 1], [], []>} : vector<8x128xbf16>, vector<128x128xbf16>, vector<8x128xf32> -> vector<8x128xf32>
    %90 = arith.addf %84, %89 : vector<8x128xf32>
    %c0_44 = arith.constant 0 : index
    %c0_45 = arith.constant 0 : index
    %91 = vector.load %arg8[%c0_44, %c0_45] : memref<1x128xf32, #tpu.memory_space<vmem>>, vector<1x128xf32>
    %92 = vector.broadcast %91 : vector<1x128xf32> to vector<8x128xf32>
    %93 = arith.addf %90, %92 : vector<8x128xf32>
    %cst_46 = arith.constant 0.000000e+00 : f32
    %94 = vector.broadcast %cst_46 : f32 to vector<8x128xf32>
    %95 = arith.maximumf %93, %94 : vector<8x128xf32>
    %96 = arith.truncf %95 : vector<8x128xf32> to vector<8x128xbf16>
    %c0_47 = arith.constant 0 : index
    %c0_48 = arith.constant 0 : index
    %97 = vector.load %arg9[%c0_47, %c0_48] : memref<128x128xbf16, #tpu.memory_space<vmem>>, vector<128x128xbf16>
    %cst_49 = arith.constant dense<0.000000e+00> : vector<8x128xf32>
    %98 = tpu.matmul %96, %97, %cst_49 {dimension_numbers = #tpu.dot_dimension_numbers<[1], [0], [0], [1], [0, 0, 1, 1], [], []>} : vector<8x128xbf16>, vector<128x128xbf16>, vector<8x128xf32> -> vector<8x128xf32>
    %c0_50 = arith.constant 0 : index
    %c0_51 = arith.constant 0 : index
    %99 = vector.load %arg10[%c0_50, %c0_51] : memref<1x128xf32, #tpu.memory_space<vmem>>, vector<1x128xf32>
    %100 = vector.broadcast %99 : vector<1x128xf32> to vector<8x128xf32>
    %101 = arith.addf %98, %100 : vector<8x128xf32>
    %cst_52 = arith.constant dense<0xFF800000> : vector<8xf32>
    %102 = vector.multi_reduction <maximumf>, %101, %cst_52 [1] : vector<8x128xf32> to vector<8xf32>
    %103 = vector.shape_cast %102 : vector<8xf32> to vector<8x1xf32>
    %104 = vector.broadcast %103 : vector<8x1xf32> to vector<8x128xf32>
    %105 = arith.subf %101, %104 : vector<8x128xf32>
    %106 = math.exp %105 : vector<8x128xf32>
    %cst_53 = arith.constant dense<0.000000e+00> : vector<8xf32>
    %107 = vector.multi_reduction <add>, %106, %cst_53 [1] : vector<8x128xf32> to vector<8xf32>
    %108 = vector.shape_cast %107 : vector<8xf32> to vector<8x1xf32>
    %109 = math.log %108 : vector<8x1xf32>
    %110 = arith.addf %109, %103 : vector<8x1xf32>
    %111 = vector.broadcast %110 : vector<8x1xf32> to vector<8x128xf32>
    %112 = arith.subf %101, %111 : vector<8x128xf32>
    %c0_54 = arith.constant 0 : index
    %c0_55 = arith.constant 0 : index
    %113 = vector.load %arg11[%c0_54, %c0_55] : memref<8x128xf32, #tpu.memory_space<vmem>>, vector<8x128xf32>
    tpu.vector_store %arg11[%c0_54, %c0_55], %112 {strides = array<i32>} : memref<8x128xf32, #tpu.memory_space<vmem>>, vector<8x128xf32>,
    return
  }
  func.func @transform_0(%arg0: i32) -> (i32, i32, i32) {
    %c0_i32 = arith.constant 0 : i32
    %c0_i32_0 = arith.constant 0 : i32
    %c0_i32_1 = arith.constant 0 : i32
    return %arg0, %c0_i32, %c0_i32_0 : i32, i32, i32
  }
  func.func @transform_1(%arg0: i32) -> (i32, i32) {
    %c0_i32 = arith.constant 0 : i32
    %c0_i32_0 = arith.constant 0 : i32
    %c0_i32_1 = arith.constant 0 : i32
    return %c0_i32, %c0_i32_0 : i32, i32
  }
  func.func @transform_2(%arg0: i32) -> (i32, i32) {
    %c0_i32 = arith.constant 0 : i32
    %c0_i32_0 = arith.constant 0 : i32
    %c0_i32_1 = arith.constant 0 : i32
    return %c0_i32, %c0_i32_0 : i32, i32
  }
  func.func @transform_3(%arg0: i32) -> (i32, i32, i32) {
    %c0_i32 = arith.constant 0 : i32
    %c0_i32_0 = arith.constant 0 : i32
    %c0_i32_1 = arith.constant 0 : i32
    %c0_i32_2 = arith.constant 0 : i32
    return %c0_i32, %c0_i32_0, %c0_i32_1 : i32, i32, i32
  }
  func.func @transform_4(%arg0: i32) -> (i32, i32) {
    %c0_i32 = arith.constant 0 : i32
    %c0_i32_0 = arith.constant 0 : i32
    %c0_i32_1 = arith.constant 0 : i32
    return %c0_i32, %c0_i32_0 : i32, i32
  }
  func.func @transform_5(%arg0: i32) -> (i32, i32) {
    %c0_i32 = arith.constant 0 : i32
    %c0_i32_0 = arith.constant 0 : i32
    %c0_i32_1 = arith.constant 0 : i32
    return %c0_i32, %c0_i32_0 : i32, i32
  }
  func.func @transform_6(%arg0: i32) -> (i32, i32, i32) {
    %c0_i32 = arith.constant 0 : i32
    %c0_i32_0 = arith.constant 0 : i32
    %c0_i32_1 = arith.constant 0 : i32
    %c0_i32_2 = arith.constant 0 : i32
    return %c0_i32, %c0_i32_0, %c0_i32_1 : i32, i32, i32
  }
  func.func @transform_7(%arg0: i32) -> (i32, i32) {
    %c0_i32 = arith.constant 0 : i32
    %c0_i32_0 = arith.constant 0 : i32
    %c0_i32_1 = arith.constant 0 : i32
    return %c0_i32, %c0_i32_0 : i32, i32
  }
  func.func @transform_8(%arg0: i32) -> (i32, i32) {
    %c0_i32 = arith.constant 0 : i32
    %c0_i32_0 = arith.constant 0 : i32
    %c0_i32_1 = arith.constant 0 : i32
    return %c0_i32, %c0_i32_0 : i32, i32
  }
  func.func @transform_9(%arg0: i32) -> (i32, i32) {
    %c0_i32 = arith.constant 0 : i32
    %c0_i32_0 = arith.constant 0 : i32
    %c0_i32_1 = arith.constant 0 : i32
    return %c0_i32, %c0_i32_0 : i32, i32
  }
  func.func @transform_10(%arg0: i32) -> (i32, i32) {
    %c0_i32 = arith.constant 0 : i32
    %c0_i32_0 = arith.constant 0 : i32
    return %arg0, %c0_i32 : i32, i32
  }
}

</mosaic_0001>

<bundles_post_ra>
// kernel: net_post_forward.1
= control target key start
LH: loop header
LB: loop body
LE: loop exit
PB: predicated region body
PF: predicated region fallthrough
CT: control target
= control target key end

     0   :  { %15 = vsyncpa [#allocation3], 0  ;;  %s5174_s0 = inlined_call_operand.vmem [shape: bf16[8,12,168], index: 0, kind: input, shape index: {}]   ;;  %s5175_s1 = inlined_call_operand.vmem [shape: bf16[168,512], index: 1, kind: input, shape index: {}]   ;;  %s5176_s2 = inlined_call_operand.vmem [shape: f32[1,512], index: 2, kind: input, shape index: {}]   ;;  %s5177_s3 = inlined_call_operand.hbm [shape: bf16[5,128,256], index: 3, kind: input, shape index: {}]   ;;  %s5178_s4 = inlined_call_operand.vmem [shape: f32[8,256], index: 4, kind: input, shape index: {}]   ;;  %s5179_s5 = inlined_call_operand.vmem [shape: f32[8,256], index: 5, kind: input, shape index: {}]   ;;  %s5180_s6 = inlined_call_operand.hbm [shape: bf16[4,128,128], index: 6, kind: input, shape index: {}]   ;;  %s5181_s7 = inlined_call_operand.vmem [shape: f32[1,128], index: 7, kind: input, shape index: {}]   ;;  %s5182_s8 = inlined_call_operand.vmem [shape: bf16[128,128], index: 8, kind: input, shape index: {}]   ;;  %s5183_s9 = inlined_call_operand.vmem [shape: f32[1,128], index: 9, kind: input, shape index: {}]   ;;  %s5184_s10 = inlined_call_operand.vmem [shape: f32[8,128], index: 10, kind: output, shape index: {}]  }
   0x1   :  { %16 = vsyncpa [#allocation5], 0  ;;  %s4101_s13 = smov [#allocation2]   ;;  %s4053_s17 = scalar_lea.hbm %s5177_s3, 10240 }
   0x2   :  { %s28_s14 = sshll.u32 %s4101_s13, 4  ;;  %p4054_p0 = scmp.ne.s32.totalorder %s5177_s3, %s4053_s17  ;;  %s29_s14 = int_to_ptr.vmem [resolvable:$true] %s28_s14 }
   0x3   :  { %p4057_p1 = scmp.lt.u32.totalorder %s4053_s17, %s5177_s3 }
   0x5   :  { %p4059_p2 = pnand %p4057_p1, %p4054_p0 }
   0x7   :  { %4062 = shalt.err (!%p4059_p2)
}
   0x8   :  { %s4063_s22 = scalar_lea.vmem %s29_s14, 10240  ;;  %p4068_p4 = scmp.lt.s32.totalorder %s29_s14, %s29_s14 }
   0x9   :  { %p4064_p3 = scmp.ne.s32.totalorder %s29_s14, %s4063_s22  ;;  %p4069_p5 = scmp.lt.s32.totalorder %s4063_s22, %s4063_s22 }
   0xb   :  { %p4070_p6 = por %p4069_p5, %p4068_p4 }
   0xd   :  { %p4071_p7 = pnand %p4070_p6, %p4064_p3 }
   0xf   :  { %4074 = shalt.err (!%p4071_p7)
}
  0x10   :  { %s4102_s23 = smov 128   ;;  %s4103_s24 = smov 8  }
  0x11   :  { %34 = dma.hbm_to_vmem [thread:$0]  %s5177_s3, 10240, %s29_s14, [#allocation3], %s4102_s23, %s4102_s23, %s4103_s24  }
  0x12   :  { %s4104_s27 = smov [#allocation4]   ;;  %s4075_s11 = scalar_lea.hbm %s5180_s6, 4096 }
  0x13   :  { %s44_s28 = sshll.u32 %s4104_s27, 4  ;;  %p4076_p8 = scmp.ne.s32.totalorder %s5180_s6, %s4075_s11  ;;  %s45_s28 = int_to_ptr.vmem [resolvable:$true] %s44_s28 }
  0x14   :  { %p4079_p9 = scmp.lt.u32.totalorder %s4075_s11, %s5180_s6 }
  0x16   :  { %p4081_p10 = pnand %p4079_p9, %p4076_p8 }
  0x18   :  { %4084 = shalt.err (!%p4081_p10)
}
  0x19   :  { %s4085_s17 = scalar_lea.vmem %s45_s28, 4096  ;;  %p4090_p12 = scmp.lt.s32.totalorder %s45_s28, %s45_s28 }
  0x1a   :  { %p4086_p11 = scmp.ne.s32.totalorder %s45_s28, %s4085_s17  ;;  %p4091_p13 = scmp.lt.s32.totalorder %s4085_s17, %s4085_s17 }
  0x1c   :  { %p4092_p0 = por %p4091_p13, %p4090_p12 }
  0x1e   :  { %p4093_p1 = pnand %p4092_p0, %p4086_p11 }
  0x20   :  { %4096 = shalt.err (!%p4093_p1)
}
  0x21   :  { %s4105_s3 = smov 64   ;;  %s4106_s14 = smov 4  }
  0x22   :  { %50 = dma.hbm_to_vmem [thread:$0]  %s5180_s6, 4096, %s45_s28, [#allocation5], %s4105_s3, %s4105_s3, %s4106_s14  }
  0x23   :  { %4097 = dma.done.wait [#allocation3], 10240  }
  0x24   :  { %4098 = vsyncadd [#allocation3], 4294957056 }
  0x25   :  { %4099 = dma.done.wait [#allocation5], 4096  }
  0x26   :  { %4100 = vsyncadd [#allocation5], 4294963200  ;;  %v3825_v0 = vld [vmem:[%s5175_s1 + $0x4] ss:$16 sps:$4 sm:$0xff]   ;;  %v3827_v1 = vld [vmem:[%s5175_s1 + $0xc] ss:$16 sps:$4 sm:$0xff]   ;;  %v260_v25 = vlaneseq }
  0x27   :  { %636 = vmatprep.subr.bf16.mxu0 %v3825_v0  ;;  %v3829_v2 = vld [vmem:[%s5175_s1] ss:$16 sps:$4 sm:$0xff]   ;;  %v3830_v3 = vld [vmem:[%s5175_s1 + $0x8] ss:$16 sps:$4 sm:$0xff]   ;;  %729 = vmatprep.subr.bf16.mxu1 %v3827_v1  ;;  %v3831_v4 = vld [vmem:[%s5175_s1 + $0x24] ss:$16 sps:$4 sm:$0xff]  }
  0x28   :  { %637 = vmatpush1.bf16.msra.mxu0 %v3829_v2  ;;  %730 = vmatpush1.bf16.msra.mxu1 %v3830_v3  ;;  %v3833_v5 = vld [vmem:[%s5175_s1 + $0x2c] ss:$16 sps:$4 sm:$0xff]   ;;  %v3835_v6 = vld [vmem:[%s5175_s1 + $0x20] ss:$16 sps:$4 sm:$0xff]   ;;  %v3836_v7 = vld [vmem:[%s5175_s1 + $0x28] ss:$16 sps:$4 sm:$0xff]  }
  0x29   :  { %638 = vmatprep.subr.bf16.mxu0 %v3831_v4  ;;  %731 = vmatprep.subr.bf16.mxu1 %v3833_v5  ;;  %v3837_v8 = vld [vmem:[%s5175_s1 + $0x44] ss:$16 sps:$4 sm:$0xff]   ;;  %v3839_v9 = vld [vmem:[%s5175_s1 + $0x4c] ss:$16 sps:$4 sm:$0xff]   ;;  %v3841_v10 = vld [vmem:[%s5175_s1 + $0x40] ss:$16 sps:$4 sm:$0xff]  }
  0x2a   :  { %v3842_v11 = vld [vmem:[%s5175_s1 + $0x48] ss:$16 sps:$4 sm:$0xff]   ;;  %v3843_v12 = vld [vmem:[%s5175_s1 + $0x64] ss:$16 sps:$4 sm:$0xff]   ;;  %v3845_v13 = vld [vmem:[%s5175_s1 + $0x6c] ss:$16 sps:$4 sm:$0xff]  }
  0x2b   :  { %v3847_v14 = vld [vmem:[%s5175_s1 + $0x60] ss:$16 sps:$4 sm:$0xff]   ;;  %v3848_v15 = vld [vmem:[%s5175_s1 + $0x68] ss:$16 sps:$4 sm:$0xff]   ;;  %v3849_v16 = vld [vmem:[%s5175_s1 + $0x84] ss:$16 sps:$4 sm:$0xff]  }
  0x2c   :  { %639 = vmatpush1.bf16.msra.mxu0 %v3835_v6  ;;  %732 = vmatpush1.bf16.msra.mxu1 %v3836_v7  ;;  %v3851_v17 = vld [vmem:[%s5175_s1 + $0x8c] ss:$16 sps:$4 sm:$0xff]   ;;  %v3853_v18 = vld [vmem:[%s5175_s1 + $0x80] ss:$16 sps:$4 sm:$0xff]   ;;  %v3854_v19 = vld [vmem:[%s5175_s1 + $0x88] ss:$16 sps:$4 sm:$0xff]  }
  0x2d   :  { %640 = vmatprep.subr.bf16.mxu0 %v3837_v8  ;;  %733 = vmatprep.subr.bf16.mxu1 %v3839_v9  ;;  %v3855_v20 = vld [vmem:[%s5175_s1 + $0xa4] ss:$16 sps:$4 sm:$0xff]   ;;  %v3857_v21 = vld [vmem:[%s5175_s1 + $0xac] ss:$16 sps:$4 sm:$0xff]   ;;  %v3859_v22 = vld [vmem:[%s5175_s1 + $0xa0] ss:$16 sps:$4 sm:$0xff]  }
  0x2e   :  { %v3860_v23 = vld [vmem:[%s5175_s1 + $0xa8] ss:$16 sps:$4 sm:$0xff]   ;;  %v3861_v24 = vld [vmem:[%s5175_s1 + $0xc4] ss:$16 sps:$4 sm:$0xff]   ;;  %v4107_v26 = vmov 1983009808  }
  0x2f   :  { %v283_v27 = vunpack.c.l.s4 %v4107_v26  ;;  %v3863_v28 = vld [vmem:[%s5175_s1 + $0xcc] ss:$16 sps:$4 sm:$0xff]   ;;  %v3865_v29 = vld [vmem:[%s5175_s1 + $0xc0] ss:$16 sps:$4 sm:$0xff]   ;;  %v3866_v30 = vld [vmem:[%s5175_s1 + $0xc8] ss:$16 sps:$4 sm:$0xff]  }
  0x30   :  { %641 = vmatpush1.bf16.msra.mxu0 %v3841_v10  ;;  %734 = vmatpush1.bf16.msra.mxu1 %v3842_v11  ;;  %v3867_v31 = vld [vmem:[%s5175_s1 + $0xe4] ss:$16 sps:$4 sm:$0xff]   ;;  %v4277_v32 = vshrl.u32 %v260_v25, 7  ;;  %v3869_v34 = vld [vmem:[%s5175_s1 + $0xec] ss:$16 sps:$4 sm:$0xff]   ;;  %vm604_vm0 = vcmask 326656  }
  0x31   :  { %642 = vmatprep.subr.bf16.mxu0 %v3843_v12  ;;  %735 = vmatprep.subr.bf16.mxu1 %v3845_v13  ;;  %v284_v33 = vunpack.c.0.s8 %v283_v27  ;;  %v3871_v35 = vld [vmem:[%s5175_s1 + $0xe0] ss:$16 sps:$4 sm:$0xff]   ;;  %v3872_v36 = vld [vmem:[%s5175_s1 + $0xe8] ss:$16 sps:$4 sm:$0xff]   ;;  %v3873_v37 = vld [vmem:[%s5175_s1 + $0x104] ss:$16 sps:$4 sm:$0xff]  }
  0x32   :  { %v3306_v38 = vld.sshfl [vmem:[%s5174_s0] sm:$0xff pattern:$0x76325410]  ;;  %v3875_v42 = vld [vmem:[%s5175_s1 + $0x10c] ss:$16 sps:$4 sm:$0xff]   ;;  %vm623_vm1 = vcmask 1043456  }
  0x33   :  { %v3307_v39 = vld.sshfl [vmem:[%s5174_s0 + $0x8] sm:$0xf pattern:$0x76325410]  ;;  %v103_v40 = vcombine.high %v3306_v38, %v3306_v38  ;;  %v4298_v41 = vsub.s32 %v284_v33, %v4277_v32  ;;  %v3877_v46 = vld [vmem:[%s5175_s1 + $0x100] ss:$16 sps:$4 sm:$0xff]  }
  0x34   :  { %643 = vmatpush1.bf16.msra.mxu0 %v3847_v14  ;;  %736 = vmatpush1.bf16.msra.mxu1 %v3848_v15  ;;  %v3308_v43 = vld.sshfl [vmem:[%s5174_s0 + $0x10] sm:$0xff pattern:$0x76325410]  ;;  %v3310_v47 = vld.sshfl [vmem:[%s5174_s0 + $0x20] sm:$0xff pattern:$0x76325410] }
  0x35   :  { %644 = vmatprep.subr.bf16.mxu0 %v3849_v16  ;;  %737 = vmatprep.subr.bf16.mxu1 %v3851_v17  ;;  %v280_v44 = vcombine.low %v3306_v38, %v103_v40  ;;  %v281_v45 = vcombine.low %v3307_v39, %v3308_v43  ;;  %v3878_v48 = vld [vmem:[%s5175_s1 + $0x108] ss:$16 sps:$4 sm:$0xff]   ;;  %v3879_v49 = vld [vmem:[%s5175_s1 + $0x124] ss:$16 sps:$4 sm:$0xff]   ;;  %v3881_v50 = vld [vmem:[%s5175_s1 + $0x12c] ss:$16 sps:$4 sm:$0xff]   ;;  %v118_v51 = vcombine.high %v3308_v43, %v3308_v43 }
  0x36   :  { %v256_v54 = vld [vmem:[%s5175_s1 + $0x140] sm:$0xff]  ;;  %v3309_v55 = vld.sshfl [vmem:[%s5174_s0 + $0x18] sm:$0xf pattern:$0x76325410]  ;;  %v133_v56 = vcombine.high %v3310_v47, %v3310_v47  ;;  %v257_v57 = vld [vmem:[%s5175_s1 + $0x148] sm:$0xff] }
  0x37   :  { %v288_v52 = vrot.slane %v280_v44, %v4298_v41  ;;  %v295_v53 = vrot.slane %v281_v45, %v4298_v41  ;;  %v3883_v59 = vld [vmem:[%s5175_s1 + $0x120] ss:$16 sps:$4 sm:$0xff]   ;;  %v3884_v60 = vld [vmem:[%s5175_s1 + $0x128] ss:$16 sps:$4 sm:$0xff]   ;;  %v3363_v61 = vcombine.high %v256_v54, %v256_v54  ;;  %v298_v62 = vcombine.low %v118_v51, %v3309_v55  ;;  %v3891_v6 = vld [vmem:[#allocation2 + $0x84] ss:$8 sps:$4 sm:$0xff]  }
  0x38   :  { %645 = vmatpush1.bf16.msra.mxu0 %v3853_v18  ;;  %738 = vmatpush1.bf16.msra.mxu1 %v3854_v19  ;;  %v299_v63 = vcombine.low %v3310_v47, %v133_v56  ;;  %v3365_v0 = vcombine.high %v257_v57, %v257_v57  ;;  %v3362_v1 = vcombine.low %v256_v54, %v256_v54  ;;  %v3312_v3 = vld.sshfl [vmem:[%s5174_s0 + $0x30] sm:$0xff pattern:$0x76325410]  ;;  %v3314_v13 = vld.sshfl [vmem:[%s5174_s0 + $0x40] sm:$0xff pattern:$0x76325410] }
  0x39   :  { %646 = vmatprep.subr.bf16.mxu0 %v3855_v20  ;;  %739 = vmatprep.subr.bf16.mxu1 %v3857_v21  ;;  %v297_v58 = vcombine.high %v288_v52, %v295_v53  ;;  %v3364_v2 = vcombine.low %v257_v57, %v257_v57  ;;  %v3311_v4 = vld.sshfl [vmem:[%s5174_s0 + $0x28] sm:$0xf pattern:$0x76325410]  ;;  %v306_v7 = vrot.slane %v298_v62, %v4298_v41  ;;  %v3892_v54 = vld [vmem:[#allocation2 + $0x90] ss:$8 sps:$4 sm:$0xff]  }
  0x3a   :  { %v3313_v5 = vld.sshfl [vmem:[%s5174_s0 + $0x38] sm:$0xf pattern:$0x76325410]  ;;  %v313_v8 = vrot.slane %v299_v63, %v4298_v41  ;;  %v148_v9 = vcombine.high %v3312_v3, %v3312_v3  ;;  %v625_v10 = vsel %vm623_vm1, %v3362_v1, 0  ;;  %v296_v12 = vcombine.low %v288_v52, %v295_v53 }
  0x3b   :  { %3367 = vmatprep.mubr.msk.bf16.mxu0 %vm604_vm0, %v297_v58  ;;  %3374 = vmatprep.mubr.msk.bf16.mxu1 %vm604_vm0, %v297_v58  ;;  %v631_v11 = vsel %vm623_vm1, %v3364_v2, 0  ;;  %v3889_v14 = vld [vmem:[#allocation2 + $0x80] ss:$8 sps:$4 sm:$0xff]   ;;  %v316_v16 = vcombine.low %v3311_v4, %v3312_v3  ;;  %v3316_v19 = vld.sshfl [vmem:[%s5174_s0 + $0x50] sm:$0xff pattern:$0x76325410] }
  0x3c   :  { %647 = vmatpush1.bf16.msra.mxu0 %v3859_v22  ;;  %740 = vmatpush1.bf16.msra.mxu1 %v3860_v23  ;;  %v315_v15 = vcombine.high %v306_v7, %v313_v8  ;;  %v317_v17 = vcombine.low %v148_v9, %v3313_v5  ;;  %v3315_v18 = vld.sshfl [vmem:[%s5174_s0 + $0x48] sm:$0xf pattern:$0x76325410]  ;;  %v163_v22 = vcombine.high %v3314_v13, %v3314_v13  ;;  %v3894_v55 = vld [vmem:[#allocation2 + $0x94] ss:$8 sps:$4 sm:$0xff]  }
  0x3d   :  { %648 = vmatprep.subr.bf16.mxu0 %v3861_v24  ;;  %741 = vmatprep.subr.bf16.mxu1 %v3863_v28  ;;  %v324_v20 = vrot.slane %v316_v16, %v4298_v41  ;;  %v314_v23 = vcombine.low %v306_v7, %v313_v8  ;;  %v3318_v24 = vld.sshfl [vmem:[%s5174_s0 + $0x60] sm:$0xff pattern:$0x76325410]  ;;  %v335_v27 = vcombine.low %v3315_v18, %v3316_v19  ;;  %v3900_v58 = vld [vmem:[#allocation2 + $0xb4] ss:$8 sps:$4 sm:$0xff]   ;;  %v4108_v4 = vmov 0  }
  0x3e   :  { %v331_v21 = vrot.slane %v317_v17, %v4298_v41  ;;  %v334_v26 = vcombine.low %v3314_v13, %v163_v22  ;;  %v3317_v28 = vld.sshfl [vmem:[%s5174_s0 + $0x58] sm:$0xf pattern:$0x76325410]  ;;  %v193_v33 = vcombine.high %v3318_v24, %v3318_v24  ;;  %v3897_v56 = vld [vmem:[#allocation2 + $0xa4] ss:$8 sps:$4 sm:$0xff]  }
  0x3f   :  { %v3319_v39 = vld.sshfl [vmem:[%s5174_s0 + $0x68] sm:$0xf pattern:$0x76325410]  ;;  %v3906_v62 = vld [vmem:[#allocation2 + $0xd4] ss:$8 sps:$4 sm:$0xff]  }
  0x40   :  { %649 = vmatpush1.bf16.msra.mxu0 %v3865_v29  ;;  %742 = vmatpush1.bf16.msra.mxu1 %v3866_v30  ;;  %v333_v25 = vcombine.high %v324_v20, %v331_v21  ;;  %v178_v29 = vcombine.high %v3316_v19, %v3316_v19  ;;  %v342_v30 = vrot.slane %v334_v26, %v4298_v41  ;;  %v3321_v40 = vld.sshfl [vmem:[%s5174_s0 + $0x78] sm:$0xf pattern:$0x76325410]  ;;  %v3895_v57 = vld [vmem:[#allocation2 + $0xa0] ss:$8 sps:$4 sm:$0xff]  }
  0x41   :  { %650 = vmatprep.subr.bf16.mxu0 %v3867_v31  ;;  %743 = vmatprep.subr.bf16.mxu1 %v3869_v34  ;;  %v349_v31 = vrot.slane %v335_v27, %v4298_v41  ;;  %v332_v34 = vcombine.low %v324_v20, %v331_v21  ;;  %v353_v38 = vcombine.low %v3318_v24, %v193_v33  ;;  %v3904_v63 = vld [vmem:[#allocation2 + $0xd0] ss:$8 sps:$4 sm:$0xff]   ;;  %v3907_v1 = vld [vmem:[#allocation2 + $0xe0] ss:$8 sps:$4 sm:$0xff]   ;;  %v3912_v2 = vld [vmem:[#allocation2 + $0xf4] ss:$8 sps:$4 sm:$0xff]  }
  0x42   :  { %v3910_v3 = vld [vmem:[#allocation2 + $0xf0] ss:$8 sps:$4 sm:$0xff]   ;;  %v3915_v5 = vld [vmem:[#allocation2 + $0x4] ss:$8 sps:$4 sm:$0xff]   ;;  %v270_v7 = vsub.s32 2, %v4277_v32  ;;  %v266_v9 = vsub.s32 1, %v4277_v32 }
  0x43   :  { %v367_v43 = vrot.slane %v353_v38, %v4298_v41  ;;  %v350_v45 = vcombine.low %v342_v30, %v349_v31  ;;  %v258_v8 = vld [vmem:[%s5176_s2] sm:$0xf]  ;;  %vm978_vm2 = vsmask.f32 3328  ;;  %vm979_vm3 = vsmask.f32 7440 }
  0x44   :  { %651 = vmatpush1.bf16.msra.mxu0 %v3871_v35  ;;  %744 = vmatpush1.bf16.msra.mxu1 %v3872_v36  ;;  %v3320_v35 = vld.sshfl [vmem:[%s5174_s0 + $0x70] sm:$0xff pattern:$0x76325410]  ;;  %v351_v36 = vcombine.high %v342_v30, %v349_v31  ;;  %v4405_v13 = vrot.slane %v258_v8, %v266_v9  ;;  %vm4514_vm4 = vmor %vm978_vm2, %vm979_vm3  ;;  %vm1440_vm5 = vcmask 1042432   ;;  %vm1441_vm6 = vcmask 1046532  }
  0x45   :  { %652 = vmatprep.subr.bf16.mxu0 %v3873_v37  ;;  %745 = vmatprep.subr.bf16.mxu1 %v3875_v42  ;;  %v352_v37 = vcombine.low %v178_v29, %v3317_v28  ;;  %v208_v44 = vcombine.high %v3320_v35, %v3320_v35  ;;  %v370_v47 = vcombine.low %v3319_v39, %v3320_v35  ;;  %vm4634_vm7 = vmor %vm1440_vm5, %vm1441_vm6  ;;  %vm1677_vm8 = vsmask.f32 2304 }
  0x46   :  { %vm1678_vm9 = vsmask.f32 6416  ;;  %vm1962_vm10 = vcmask 1041408   ;;  %vm1963_vm11 = vcmask 1045508   ;;  %vm4110_vm14 = vmmov 0  }
  0x47   :  { %v360_v42 = vrot.slane %v352_v37, %v4298_v41  ;;  %vm4724_vm12 = vmor %vm1677_vm8, %vm1678_vm9  ;;  %vm2661_vm15 = vcmask 1041409   ;;  %vm2670_vm2 = vcmask 1044484   ;;  %vm2673_vm3 = vcmask 1045509  }
  0x48   :  { %653 = vmatpush1.bf16.msra.mxu0 %v3877_v46  ;;  %746 = vmatpush1.bf16.msra.mxu1 %v3878_v48  ;;  %v371_v48 = vcombine.low %v208_v44, %v3321_v40  ;;  %vm4787_vm13 = vmor %vm1962_vm10, %vm1963_vm11  ;;  %vm2679_vm5 = vcmask 1047559  }
  0x49   :  { %654 = vmatprep.subr.bf16.mxu0 %v3879_v49  ;;  %747 = vmatprep.subr.bf16.mxu1 %v3881_v50  ;;  %v369_v46 = vcombine.high %v360_v42, %v367_v43  ;;  %v378_v49 = vrot.slane %v370_v47, %v4298_v41  ;;  %v368_v51 = vcombine.low %v360_v42, %v367_v43 }
  0x4a   :  { %v385_v50 = vrot.slane %v371_v48, %v4298_v41 }
  0x4c   :  { %655 = vmatpush1.bf16.msra.mxu0 %v3883_v59  ;;  %748 = vmatpush1.bf16.msra.mxu1 %v3884_v60  ;;  %v387_v52 = vcombine.high %v378_v49, %v385_v50  ;;  %v386_v53 = vcombine.low %v378_v49, %v385_v50  ;;  %v3898_v59 = vld [vmem:[#allocation2 + $0xb0] ss:$8 sps:$4 sm:$0xff]   ;;  %v3903_v60 = vld [vmem:[#allocation2 + $0xc4] ss:$8 sps:$4 sm:$0xff]  }
  0x4d   :  { %3366 = vmatprep.subr.msk.bf16.mxu0 %vm623_vm1, %v3363_v61  ;;  %3373 = vmatprep.subr.msk.bf16.mxu1 %vm623_vm1, %v3365_v0  ;;  %v3901_v61 = vld [vmem:[#allocation2 + $0xc0] ss:$8 sps:$4 sm:$0xff]   ;;  %v3909_v0 = vld [vmem:[#allocation2 + $0xe4] ss:$8 sps:$4 sm:$0xff]   ;;  %vm2667_vm1 = vcmask 1043459  }
  0x50   :  { %657 = vmatpush1.bf16.msra.mxu0 %v625_v10  ;;  %750 = vmatpush1.bf16.msra.mxu1 %v631_v11  ;;  %v274_v10 = vsub.s32 3, %v4277_v32 }
  0x51   :  { %1206 = vmatprep.subr.bf16.mxu0 %v3891_v6  ;;  %v262_v6 = vsub.s32 0, %v4277_v32 }
  0x53   :  { %669 = vmatmul.mubr.bf16.vlgmr.msra.gmra.mrb[0].mxu0 %v296_v12  ;;  %762 = vmatmul.mubr.bf16.vlgmr.msra.gmra.mrb[0].mxu1 %v296_v12  ;;  %v4401_v11 = vrot.slane %v258_v8, %v262_v6  ;;  %v4403_v12 = vrot.slane %v258_v8, %v270_v7 }
  0x54   :  { %3368 = vmatprep.mubr.msk.bf16.mxu0 %vm604_vm0, %v315_v15  ;;  %3375 = vmatprep.mubr.msk.bf16.mxu1 %vm604_vm0, %v315_v15 }
  0x55   :  { %1207 = vmatpush1.bf16.msra.mxu0 %v3889_v14  ;;  %v4407_v14 = vrot.slane %v258_v8, %v274_v10  ;;  %v3916_v10 = vld [vmem:[#allocation2 + $0x10] ss:$8 sps:$4 sm:$0xff]  }
  0x56   :  { %1208 = vmatprep.subr.bf16.mxu0 %v3894_v55 }
  0x59   :  { %1209 = vmatpush1.bf16.msra.mxu0 %v3892_v54 }
  0x5a   :  { %1210 = vmatprep.subr.bf16.mxu0 %v3897_v56 }
  0x5b   :  { %679 = vmatmul.mubr.bf16.gmra.mrb[4].mxu0 %v314_v23  ;;  %772 = vmatmul.mubr.bf16.gmra.mrb[4].mxu1 %v314_v23 }
  0x5c   :  { %3369 = vmatprep.mubr.msk.bf16.mxu0 %vm604_vm0, %v333_v25  ;;  %3376 = vmatprep.mubr.msk.bf16.mxu1 %vm604_vm0, %v333_v25 }
  0x5d   :  { %1211 = vmatpush1.bf16.msra.mxu0 %v3895_v57 }
  0x5e   :  { %1212 = vmatprep.subr.bf16.mxu0 %v3900_v58 }
  0x61   :  { %1213 = vmatpush1.bf16.msra.mxu0 %v3898_v59 }
  0x62   :  { %1214 = vmatprep.subr.bf16.mxu0 %v3903_v60 }
  0x63   :  { %689 = vmatmul.mubr.bf16.gmra.mrb[8].mxu0 %v332_v34  ;;  %782 = vmatmul.mubr.bf16.gmra.mrb[8].mxu1 %v332_v34 }
  0x64   :  { %3370 = vmatprep.mubr.msk.bf16.mxu0 %vm604_vm0, %v351_v36  ;;  %3377 = vmatprep.mubr.msk.bf16.mxu1 %vm604_vm0, %v351_v36 }
  0x65   :  { %1215 = vmatpush1.bf16.msra.mxu0 %v3901_v61 }
  0x66   :  { %1216 = vmatprep.subr.bf16.mxu0 %v3906_v62 }
  0x69   :  { %1217 = vmatpush1.bf16.msra.mxu0 %v3904_v63 }
  0x6a   :  { %1218 = vmatprep.subr.bf16.mxu0 %v3909_v0 }
  0x6b   :  { %699 = vmatmul.mubr.bf16.gmra.mrb[12].mxu0 %v350_v45  ;;  %792 = vmatmul.mubr.bf16.gmra.mrb[12].mxu1 %v350_v45 }
  0x6c   :  { %3371 = vmatprep.mubr.msk.bf16.mxu0 %vm604_vm0, %v369_v46  ;;  %3378 = vmatprep.mubr.msk.bf16.mxu1 %vm604_vm0, %v369_v46 }
  0x6d   :  { %1219 = vmatpush1.bf16.msra.mxu0 %v3907_v1 }
  0x6e   :  { %1220 = vmatprep.subr.bf16.mxu0 %v3912_v2 }
  0x71   :  { %1221 = vmatpush1.bf16.msra.mxu0 %v3910_v3 }
  0x72   :  { %1367 = vmatprep.subr.bf16.mxu0 %v3915_v5 }
  0x73   :  { %709 = vmatmul.mubr.bf16.gmra.mrb[16].mxu0 %v368_v51  ;;  %802 = vmatmul.mubr.bf16.gmra.mrb[16].mxu1 %v368_v51 }
  0x74   :  { %3372 = vmatprep.mubr.msk.bf16.mxu0 %vm604_vm0, %v387_v52  ;;  %3379 = vmatprep.mubr.msk.bf16.mxu1 %vm604_vm0, %v387_v52  ;;  %vm2664_vm0 = vcmask 1042434  }
  0x7b   :  { %719 = vmatmul.mubr.bf16.gmra.mrb[20].mxu0 %v386_v53  ;;  %812 = vmatmul.mubr.bf16.gmra.mrb[20].mxu1 %v386_v53 }
  0x7c   :  { %1238 = vmatprep.mubr.bf16.mxu0 %v4108_v4 }
 0x126   :  { %v670_v15 = vpop.f32.mrb[0].mxu0  ;;  %v763_v16 = vpop.f32.mrb[0].mxu1 }
 0x127   :  { %v671_v17 = vadd.f32 %v670_v15, %v4401_v11  ;;  %v764_v18 = vadd.f32 %v763_v16, %v4403_v12  ;;  %v672_v19 = vpop.f32.mrb[1].mxu0  ;;  %v765_v20 = vpop.f32.mrb[1].mxu1 }
 0x128   :  { %v673_v21 = vadd.f32 %v672_v19, %v4405_v13  ;;  %v766_v32 = vadd.f32 %v765_v20, %v4407_v14  ;;  %v674_v22 = vpop.f32.mrb[2].mxu0  ;;  %v767_v23 = vpop.f32.mrb[2].mxu1 }
 0x129   :  { %v675_v24 = vadd.f32 %v674_v22, %v4401_v11  ;;  %v768_v25 = vadd.f32 %v767_v23, %v4403_v12  ;;  %v676_v26 = vpop.f32.mrb[3].mxu0  ;;  %v769_v27 = vpop.f32.mrb[3].mxu1 }
 0x12a   :  { %v822_v28 = vmax.f32 %v671_v17, %v673_v21  ;;  %v834_v29 = vmax.f32 %v764_v18, %v766_v32  ;;  %v677_v30 = vadd.f32 %v676_v26, %v4405_v13  ;;  %v770_v31 = vadd.f32 %v769_v27, %v4407_v14 }
 0x12c   :  { %v846_v33 = vmax.f32 %v822_v28, %v834_v29  ;;  %v823_v34 = vmax.f32 %v675_v24, %v677_v30  ;;  %v835_v35 = vmax.f32 %v768_v25, %v770_v31 }
 0x12e   :  { %v858_v36 = vmax.f32 %v846_v33, 0.0  ;;  %v847_v37 = vmax.f32 %v823_v34, %v835_v35  ;;  %v680_v38 = vpop.f32.mrb[4].mxu0  ;;  %v773_v39 = vpop.f32.mrb[4].mxu1 }
 0x12f   :  { %v681_v40 = vadd.f32 %v680_v38, %v4401_v11  ;;  %v774_v42 = vadd.f32 %v773_v39, %v4403_v12  ;;  %v682_v43 = vpop.f32.mrb[5].mxu0  ;;  %v775_v44 = vpop.f32.mrb[5].mxu1 }
 0x130   :  { %v882_v45 = vcombine.high %v858_v36, %v858_v36  ;;  %v859_v46 = vmax.f32 %v847_v37, 0.0  ;;  %v683_v47 = vadd.f32 %v682_v43, %v4405_v13  ;;  %v776_v48 = vadd.f32 %v775_v44, %v4407_v14  ;;  %v684_v49 = vpop.f32.mrb[6].mxu0  ;;  %v777_v50 = vpop.f32.mrb[6].mxu1 }
 0x131   :  { %v685_v51 = vadd.f32 %v684_v49, %v4401_v11  ;;  %v778_v52 = vadd.f32 %v777_v50, %v4403_v12  ;;  %v686_v53 = vpop.f32.mrb[7].mxu0  ;;  %v779_v54 = vpop.f32.mrb[7].mxu1 }
 0x132   :  { %v4423_v55 = vcombine.low %v858_v36, %v882_v45  ;;  %v4425_v56 = vpack.c.bf16 %v859_v46, %v859_v46  ;;  %v824_v57 = vmax.f32 %v681_v40, %v683_v47  ;;  %v883_v58 = vcombine.high %v859_v46, %v859_v46 }
 0x133   :  { %v836_v59 = vmax.f32 %v774_v42, %v776_v48  ;;  %v687_v60 = vadd.f32 %v686_v53, %v4405_v13  ;;  %v780_v61 = vadd.f32 %v779_v54, %v4407_v14 }
 0x134   :  { %v4431_v62 = vpack.c.bf16 %v4423_v55, %v4423_v55  ;;  %v991_v63 = vshll.u32 %v4425_v56, 16  ;;  %v1445_v0 = vrot.slane %v4425_v56, 5  ;;  %v1684_v1 = vshrl.u32 %v4425_v56, 16 }
 0x135   :  { %v848_v3 = vmax.f32 %v824_v57, %v836_v59  ;;  %v825_v5 = vmax.f32 %v685_v51, %v687_v60  ;;  %v837_v6 = vmax.f32 %v778_v52, %v780_v61 }
 0x136   :  { %v982_v7 = vshrl.u32 %v4431_v62, 16  ;;  %v985_v8 = vshll.u32 %v4431_v62, 16  ;;  %v3436_v9 = vrot.slane %v4431_v62, 9  ;;  %v690_v15 = vpop.f32.mrb[8].mxu0  ;;  %v783_v16 = vpop.f32.mrb[8].mxu1  ;;  %v4441_v17 = vrot.slane %v991_v63, 5 }
 0x137   :  { %v4443_v18 = vrot.slane %v1684_v1, 5  ;;  %v4445_v19 = vrot.slane %v991_v63, 6  ;;  %v860_v20 = vmax.f32 %v848_v3, 0.0  ;;  %v692_v21 = vpop.f32.mrb[9].mxu0  ;;  %v785_v32 = vpop.f32.mrb[9].mxu1  ;;  %v849_v30 = vmax.f32 %v825_v5, %v837_v6 }
 0x138   :  { %v4447_v22 = vrot.slane %v982_v7, 4  ;;  %v4449_v23 = vrot.slane %v985_v8, 5  ;;  %v4451_v24 = vrot.slane %v982_v7, 5  ;;  %v4453_v25 = vrot.slane %v985_v8, 6  ;;  %v694_v26 = vpop.f32.mrb[10].mxu0  ;;  %v787_v27 = vpop.f32.mrb[10].mxu1 }
 0x139   :  { %v884_v28 = vcombine.high %v860_v20, %v860_v20  ;;  %v4455_v29 = vcombine.low %v883_v58, %v860_v20  ;;  %v691_v31 = vadd.f32 %v690_v15, %v4401_v11  ;;  %v696_v33 = vpop.f32.mrb[11].mxu0  ;;  %v789_v34 = vpop.f32.mrb[11].mxu1  ;;  %v784_v35 = vadd.f32 %v783_v16, %v4403_v12 }
 0x13a   :  { %v693_v36 = vadd.f32 %v692_v21, %v4405_v13  ;;  %v786_v37 = vadd.f32 %v785_v32, %v4407_v14  ;;  %v695_v38 = vadd.f32 %v694_v26, %v4401_v11  ;;  %v861_v43 = vmax.f32 %v849_v30, 0.0 }
 0x13b   :  { %v4464_v39 = vpack.c.bf16 %v4455_v29, %v4455_v29  ;;  %v4466_v40 = vpack.c.bf16 %v884_v28, %v884_v28  ;;  %v788_v46 = vadd.f32 %v787_v27, %v4403_v12  ;;  %v697_v47 = vadd.f32 %v696_v33, %v4405_v13 }
 0x13c   :  { %v826_v44 = vmax.f32 %v691_v31, %v693_v36  ;;  %v838_v45 = vmax.f32 %v784_v35, %v786_v37  ;;  %v885_v8 = vcombine.high %v861_v43, %v861_v43  ;;  %v790_v32 = vadd.f32 %v789_v34, %v4407_v14 }
 0x13d   :  { %v996_v48 = vshrl.u32 %v4464_v39, 16  ;;  %v999_v49 = vshll.u32 %v4464_v39, 16  ;;  %v1005_v50 = vshll.u32 %v4466_v40, 16  ;;  %v3437_v51 = vrot.slane %v4464_v39, 9 }
 0x13e   :  { %v1449_v52 = vrot.slane %v4466_v40, 5  ;;  %v1694_v53 = vshrl.u32 %v4466_v40, 16  ;;  %v700_v58 = vpop.f32.mrb[12].mxu0  ;;  %v793_v59 = vpop.f32.mrb[12].mxu1  ;;  %v850_v15 = vmax.f32 %v826_v44, %v838_v45  ;;  %v827_v21 = vmax.f32 %v695_v38, %v697_v47 }
 0x13f   :  { %v4480_v60 = vrot.slane %v996_v48, 4  ;;  %v1001_v61 = vrot.slane %v999_v49, 5  ;;  %v4482_v63 = vrot.slane %v996_v48, 5  ;;  %v4484_v1 = vrot.slane %v999_v49, 6  ;;  %v702_v3 = vpop.f32.mrb[13].mxu0  ;;  %v795_v5 = vpop.f32.mrb[13].mxu1 }
 0x140   :  { %v4486_v6 = vrot.slane %v1694_v53, 5  ;;  %v4488_v7 = vrot.slane %v1005_v50, 6  ;;  %v704_v16 = vpop.f32.mrb[14].mxu0  ;;  %v797_v20 = vpop.f32.mrb[14].mxu1  ;;  %v701_v26 = vadd.f32 %v700_v58, %v4401_v11  ;;  %v794_v27 = vadd.f32 %v793_v59, %v4403_v12 }
 0x141   :  { %v706_v28 = vpop.f32.mrb[15].mxu0  ;;  %v799_v30 = vpop.f32.mrb[15].mxu1  ;;  %v4493_v31 = vcombine.low %v861_v43, %v885_v8  ;;  %v862_v33 = vmax.f32 %v850_v15, 0.0  ;;  %v703_v35 = vadd.f32 %v702_v3, %v4405_v13  ;;  %v796_v36 = vadd.f32 %v795_v5, %v4407_v14 }
 0x142   :  { %v839_v37 = vmax.f32 %v788_v46, %v790_v32  ;;  %v705_v44 = vadd.f32 %v704_v16, %v4401_v11  ;;  %v798_v38 = vadd.f32 %v797_v20, %v4403_v12  ;;  %v707_v34 = vadd.f32 %v706_v28, %v4405_v13 }
 0x143   :  { %v4502_v45 = vpack.c.bf16 %v4493_v31, %v4493_v31  ;;  %v886_v47 = vcombine.high %v862_v33, %v862_v33  ;;  %v4504_v48 = vpack.c.bf16 %v862_v33, %v862_v33  ;;  %v828_v43 = vmax.f32 %v701_v26, %v703_v35 }
 0x144   :  { %v851_v49 = vmax.f32 %v827_v21, %v839_v37  ;;  %v840_v53 = vmax.f32 %v794_v27, %v796_v36  ;;  %v829_v58 = vmax.f32 %v705_v44, %v707_v34  ;;  %v800_v59 = vadd.f32 %v799_v30, %v4407_v14 }
 0x145   :  { %v988_v5 = vor.u32 %v4449_v23, %v4447_v22  ;;  %v1002_v8 = vor.u32 %v1001_v61, %v4480_v60  ;;  %v1007_v15 = vrot.slane %v1005_v50, 5  ;;  %v1010_v16 = vshrl.u32 %v4502_v45, 16 }
 0x146   :  { %v710_v46 = vpop.f32.mrb[16].mxu0  ;;  %v803_v3 = vpop.f32.mrb[16].mxu1  ;;  %v863_v20 = vmax.f32 %v851_v49, 0.0  ;;  %v852_v32 = vmax.f32 %v828_v43, %v840_v53  ;;  %v841_v28 = vmax.f32 %v798_v38, %v800_v59 }
 0x147   :  { %v711_v26 = vadd.f32 %v710_v46, %v4401_v11  ;;  %v712_v21 = vpop.f32.mrb[17].mxu0  ;;  %v805_v27 = vpop.f32.mrb[17].mxu1  ;;  %v804_v22 = vadd.f32 %v803_v3, %v4403_v12  ;;  %v989_v60 = vrot.slane %v988_v5, 4  ;;  %v1003_v59 = vrot.slane %v1002_v8, 4 }
 0x148   :  { %v713_v23 = vadd.f32 %v712_v21, %v4405_v13  ;;  %v806_v50 = vadd.f32 %v805_v27, %v4407_v14  ;;  %v714_v61 = vpop.f32.mrb[18].mxu0  ;;  %v807_v33 = vpop.f32.mrb[18].mxu1  ;;  %v887_v35 = vcombine.high %v863_v20, %v863_v20  ;;  %v4521_v36 = vcombine.low %v886_v47, %v863_v20  ;;  %v3913_v27 = vld [vmem:[#allocation2] ss:$8 sps:$4 sm:$0xff]  }
 0x149   :  { %v864_v37 = vmax.f32 %v852_v32, 0.0  ;;  %v853_v44 = vmax.f32 %v829_v58, %v841_v28  ;;  %v716_v38 = vpop.f32.mrb[19].mxu0  ;;  %v809_v34 = vpop.f32.mrb[19].mxu1  ;;  %v994_v53 = vsel %vm4514_vm4, %v989_v60, %v4441_v17  ;;  %v1008_v58 = vsel %vm4514_vm4, %v1003_v59, %v1007_v15 }
 0x14a   :  { %v830_v43 = vmax.f32 %v711_v26, %v713_v23  ;;  %v842_v49 = vmax.f32 %v804_v22, %v806_v50  ;;  %v4528_v46 = vpack.c.bf16 %v4521_v36, %v4521_v36  ;;  %v4530_v3 = vpack.c.bf16 %v887_v35, %v887_v35 }
 0x14b   :  { %v888_v5 = vcombine.high %v864_v37, %v864_v37  ;;  %v865_v47 = vmax.f32 %v853_v44, 0.0  ;;  %v715_v32 = vadd.f32 %v714_v61, %v4401_v11  ;;  %v808_v28 = vadd.f32 %v807_v33, %v4403_v12  ;;  %v3918_v61 = vld [vmem:[#allocation2 + $0x14] ss:$8 sps:$4 sm:$0xff]  }
 0x14c   :  { %v854_v20 = vmax.f32 %v830_v43, %v842_v49  ;;  %v3396_v21 = vcombine.low %v994_v53, %v1008_v58  ;;  %v717_v23 = vadd.f32 %v716_v38, %v4405_v13  ;;  %v810_v50 = vadd.f32 %v809_v34, %v4407_v14 }
 0x14d   :  { %v4536_v26 = vcombine.low %v864_v37, %v888_v5  ;;  %v889_v17 = vcombine.high %v865_v47, %v865_v47  ;;  %v4538_v8 = vpack.c.bf16 %v865_v47, %v865_v47  ;;  %v1012_v15 = vrot.slane %v1010_v16, 4 }
 0x14e   :  { %v866_v22 = vmax.f32 %v854_v20, 0.0  ;;  %v720_v60 = vpop.f32.mrb[20].mxu0  ;;  %v813_v35 = vpop.f32.mrb[20].mxu1  ;;  %1239 = vmatmul.mubr.bf16.vlgmr.msra.gmra.mrb[24].mxu0 %v3396_v21  ;;  %v1013_v38 = vshll.u32 %v4502_v45, 16  ;;  %v831_v59 = vmax.f32 %v715_v32, %v717_v23  ;;  %v843_v5 = vmax.f32 %v808_v28, %v810_v50  ;;  %v3921_v23 = vld [vmem:[#allocation2 + $0x24] ss:$8 sps:$4 sm:$0xff]  }
 0x14f   :  { %v4546_v33 = vpack.c.bf16 %v4536_v26, %v4536_v26  ;;  %v721_v37 = vadd.f32 %v720_v60, %v4401_v11  ;;  %v814_v44 = vadd.f32 %v813_v35, %v4403_v12  ;;  %v722_v43 = vpop.f32.mrb[21].mxu0  ;;  %v815_v49 = vpop.f32.mrb[21].mxu1  ;;  %1248 = vmatprep.mubr.bf16.mxu0 %v4108_v4  ;;  %1368 = vmatpush1.bf16.msra.mxu0 %v3913_v27 }
 0x150   :  { %v890_v34 = vcombine.high %v866_v22, %v866_v22  ;;  %v4551_v53 = vcombine.low %v889_v17, %v866_v22  ;;  %v724_v47 = vpop.f32.mrb[22].mxu0  ;;  %v817_v20 = vpop.f32.mrb[22].mxu1  ;;  %v723_v58 = vadd.f32 %v722_v43, %v4405_v13  ;;  %v816_v21 = vadd.f32 %v815_v49, %v4407_v14  ;;  %1369 = vmatprep.subr.bf16.mxu0 %v3918_v61 }
 0x151   :  { %v725_v60 = vadd.f32 %v724_v47, %v4401_v11  ;;  %v818_v35 = vadd.f32 %v817_v20, %v4403_v12  ;;  %v726_v54 = vpop.f32.mrb[23].mxu0  ;;  %v819_v57 = vpop.f32.mrb[23].mxu1  ;;  %v855_v17 = vmax.f32 %v831_v59, %v843_v5  ;;  %v1015_v12 = vrot.slane %v1013_v38, 5 }
 0x152   :  { %v4560_v32 = vpack.c.bf16 %v4551_v53, %v4551_v53  ;;  %v4562_v28 = vpack.c.bf16 %v890_v34, %v890_v34  ;;  %v727_v22 = vadd.f32 %v726_v54, %v4405_v13  ;;  %v832_v50 = vmax.f32 %v721_v37, %v723_v58  ;;  %v3919_v54 = vld [vmem:[#allocation2 + $0x20] ss:$8 sps:$4 sm:$0xff]  }
 0x153   :  { %v844_v43 = vmax.f32 %v814_v44, %v816_v21  ;;  %v820_v11 = vadd.f32 %v819_v57, %v4407_v14  ;;  %v867_v27 = vmax.f32 %v855_v17, 0.0  ;;  %v1019_v47 = vshll.u32 %v4504_v48, 16  ;;  %1370 = vmatpush1.bf16.msra.mxu0 %v3916_v10  ;;  %v3924_v44 = vld [vmem:[#allocation2 + $0x34] ss:$8 sps:$4 sm:$0xff]  }
 0x154   :  { %v833_v49 = vmax.f32 %v725_v60, %v727_v22  ;;  %v1024_v20 = vshrl.u32 %v4528_v46, 16  ;;  %v1016_v59 = vor.u32 %v1015_v12, %v1012_v15  ;;  %v5196_v13 = vshll.u32 %v4528_v46, 16  ;;  %1371 = vmatprep.subr.bf16.mxu0 %v3921_v23 }
 0x155   :  { %v856_v34 = vmax.f32 %v832_v50, %v844_v43  ;;  %v845_v2 = vmax.f32 %v818_v35, %v820_v11  ;;  %v891_v61 = vcombine.high %v867_v27, %v867_v27  ;;  %v1021_v14 = vrot.slane %v1019_v47, 5  ;;  %v3922_v43 = vld [vmem:[#allocation2 + $0x30] ss:$8 sps:$4 sm:$0xff]  }
 0x156   :  { %v1026_v57 = vrot.slane %v1024_v20, 4  ;;  %v5194_v37 = vshll.u32 %v4530_v3, 16  ;;  %v1017_v15 = vrot.slane %v1016_v59, 4  ;;  %v1029_v10 = vrot.slane %v5196_v13, 5 }
 0x157   :  { %v868_v5 = vmax.f32 %v856_v34, 0.0  ;;  %v857_v58 = vmax.f32 %v833_v49, %v845_v2  ;;  %v4578_v21 = vcombine.low %v867_v27, %v891_v61  ;;  %v5186_v35 = vshrl.u32 %v4546_v33, 16  ;;  %1372 = vmatpush1.bf16.msra.mxu0 %v3919_v54  ;;  %v3927_v34 = vld [vmem:[#allocation2 + $0x44] ss:$8 sps:$4 sm:$0xff]  }
 0x158   :  { %v1035_v60 = vrot.slane %v5194_v37, 5  ;;  %v5185_v17 = vshll.u32 %v4546_v33, 16  ;;  %v1022_v2 = vsel %vm4514_vm4, %v1017_v15, %v1021_v14  ;;  %v1030_v12 = vor.u32 %v1029_v10, %v1026_v57  ;;  %1373 = vmatprep.subr.bf16.mxu0 %v3924_v44 }
 0x159   :  { %v892_v22 = vcombine.high %v868_v5, %v868_v5  ;;  %v4584_v23 = vpack.c.bf16 %v868_v5, %v868_v5  ;;  %v869_v50 = vmax.f32 %v857_v58, 0.0  ;;  %v4590_v11 = vpack.c.bf16 %v4578_v21, %v4578_v21 }
 0x15a   :  { %v1040_v27 = vrot.slane %v5186_v35, 4  ;;  %v1043_v49 = vrot.slane %v5185_v17, 5  ;;  %v5187_v14 = vshll.u32 %v4538_v8, 16  ;;  %v5188_v54 = vshrl.u32 %v4560_v32, 16  ;;  %v3925_v17 = vld [vmem:[#allocation2 + $0x40] ss:$8 sps:$4 sm:$0xff]  }
 0x15b   :  { %v893_v59 = vcombine.high %v869_v50, %v869_v50  ;;  %v4596_v61 = vcombine.low %v892_v22, %v869_v50  ;;  %v1031_v5 = vrot.slane %v1030_v12, 4  ;;  %v5189_v15 = vshll.u32 %v4560_v32, 16  ;;  %1374 = vmatpush1.bf16.msra.mxu0 %v3922_v43  ;;  %v3930_v43 = vld [vmem:[#allocation2 + $0x54] ss:$8 sps:$4 sm:$0xff]  }
 0x15c   :  { %v1044_v58 = vor.u32 %v1043_v49, %v1040_v27  ;;  %v5190_v57 = vshll.u32 %v4562_v28, 16  ;;  %v1049_v22 = vrot.slane %v5187_v14, 5  ;;  %v1054_v50 = vrot.slane %v5188_v54, 4  ;;  %1375 = vmatprep.subr.bf16.mxu0 %v3927_v34 }
 0x15d   :  { %v4604_v44 = vpack.c.bf16 %v4596_v61, %v4596_v61  ;;  %v4606_v10 = vpack.c.bf16 %v893_v59, %v893_v59  ;;  %v1036_v12 = vsel %vm4514_vm4, %v1031_v5, %v1035_v60  ;;  %v1057_v49 = vrot.slane %v5189_v15, 5 }
 0x15e   :  { %v1045_v27 = vrot.slane %v1044_v58, 4  ;;  %v1063_v42 = vrot.slane %v5190_v57, 5  ;;  %v3397_v59 = vcombine.low %v1022_v2, %v1036_v12  ;;  %v5193_v35 = vshrl.u32 %v4590_v11, 16 }
 0x15f   :  { %v5192_v14 = vshll.u32 %v4590_v11, 16  ;;  %v5191_v54 = vshll.u32 %v4584_v23, 16  ;;  %v1058_v5 = vor.u32 %v1057_v49, %v1054_v50  ;;  %v5195_v58 = vshrl.u32 %v4604_v44, 16  ;;  %1376 = vmatpush1.bf16.msra.mxu0 %v3925_v17 }
 0x160   :  { %v1050_v60 = vsel %vm4514_vm4, %v1045_v27, %v1049_v22  ;;  %v1083_v15 = vshll.u32 %v4604_v44, 16  ;;  %1249 = vmatmul.mubr.bf16.gmra.mrb[28].mxu0 %v3397_v59  ;;  %v1068_v34 = vrot.slane %v5193_v35, 4  ;;  %v1089_v57 = vshll.u32 %v4606_v10, 16  ;;  %v3928_v27 = vld [vmem:[#allocation2 + $0x50] ss:$8 sps:$4 sm:$0xff]   ;;  %1377 = vmatprep.subr.bf16.mxu0 %v3930_v43 }
 0x161   :  { %v1071_v2 = vrot.slane %v5192_v14, 5  ;;  %v1077_v12 = vrot.slane %v5191_v54, 5  ;;  %1258 = vmatprep.mubr.bf16.mxu0 %v4108_v4  ;;  %v1059_v50 = vrot.slane %v1058_v5, 4  ;;  %v1082_v49 = vrot.slane %v5195_v58, 4  ;;  %v3933_v14 = vld [vmem:[#allocation2 + $0x64] ss:$8 sps:$4 sm:$0xff]  }
 0x162   :  { %v1085_v59 = vrot.slane %v1083_v15, 5  ;;  %v1091_v37 = vrot.slane %v1089_v57, 5  ;;  %v4659_v43 = vsel %vm4634_vm7, %v3436_v9, %v1445_v0  ;;  %v1453_v0 = vrot.slane %v4504_v48, 5 }
 0x163   :  { %v1072_v35 = vor.u32 %v1071_v2, %v1068_v34  ;;  %v1064_v58 = vsel %vm4514_vm4, %v1059_v50, %v1063_v42  ;;  %v4667_v34 = vsel %vm4634_vm7, %v3437_v51, %v1449_v52  ;;  %v3438_v50 = vrot.slane %v4502_v45, 9  ;;  %1378 = vmatpush1.bf16.msra.mxu0 %v3928_v27  ;;  %v3936_v52 = vld [vmem:[#allocation2 + $0x74] ss:$8 sps:$4 sm:$0xff]  }
 0x164   :  { %v1086_v13 = vor.u32 %v1085_v59, %v1082_v49  ;;  %v3398_v2 = vcombine.low %v1050_v60, %v1064_v58  ;;  %v3931_v49 = vld [vmem:[#allocation2 + $0x60] ss:$8 sps:$4 sm:$0xff]   ;;  %v3439_v9 = vrot.slane %v4528_v46, 9  ;;  %v1457_v5 = vrot.slane %v4530_v3, 5  ;;  %1379 = vmatprep.subr.bf16.mxu0 %v3933_v14 }
 0x165   :  { %v1073_v17 = vrot.slane %v1072_v35, 4  ;;  %v3440_v35 = vrot.slane %v4546_v33, 9  ;;  %v1461_v60 = vrot.slane %v4538_v8, 5  ;;  %v3441_v58 = vrot.slane %v4560_v32, 9 }
 0x166   :  { %v1087_v59 = vrot.slane %v1086_v13, 4  ;;  %v4684_v27 = vsel %vm4634_vm7, %v3438_v50, %v1453_v0  ;;  %v4688_v14 = vsel %vm4634_vm7, %v3439_v9, %v1457_v5  ;;  %v3442_v30 = vrot.slane %v4590_v11, 9  ;;  %v3939_v0 = vld [vmem:[#allocation2 + $0x104] ss:$8 sps:$4 sm:$0xff]  }
 0x167   :  { %v1078_v51 = vsel %vm4514_vm4, %v1073_v17, %v1077_v12  ;;  %v1465_v12 = vrot.slane %v4562_v28, 5  ;;  %v3445_v42 = vcombine.low %v4684_v27, %v4688_v14  ;;  %v4695_v54 = vsel %vm4634_vm7, %v3440_v35, %v1461_v60  ;;  %1380 = vmatpush1.bf16.msra.mxu0 %v3931_v49  ;;  %v3979_v27 = vld [vmem:[#allocation2 + $0x1e0] ss:$8 sps:$4 sm:$0xff]   ;;  %v3984_v14 = vld [vmem:[#allocation2 + $0x1f4] ss:$8 sps:$4 sm:$0xff]  }
 0x168   :  { %v1092_v13 = vsel %vm4514_vm4, %v1087_v59, %v1091_v37  ;;  %1259 = vmatmul.mubr.bf16.gmra.mrb[32].mxu0 %v3398_v2  ;;  %v3934_v37 = vld [vmem:[#allocation2 + $0x70] ss:$8 sps:$4 sm:$0xff]   ;;  %v1469_v2 = vrot.slane %v4584_v23, 5  ;;  %v3443_v50 = vrot.slane %v4604_v44, 9  ;;  %v1473_v59 = vrot.slane %v4606_v10, 5  ;;  %1381 = vmatprep.subr.bf16.mxu0 %v3936_v52 }
 0x169   :  { %v3399_v17 = vcombine.low %v1078_v51, %v1092_v13  ;;  %1268 = vmatprep.mubr.bf16.mxu0 %v4108_v4  ;;  %v4701_v5 = vsel %vm4634_vm7, %v3441_v58, %v1465_v12  ;;  %v1682_v51 = vor.u32 %v4453_v25, %v4451_v24  ;;  %v1688_v49 = vor.u32 %v4445_v19, %v4443_v18 }
 0x16a   :  { %v1692_v35 = vor.u32 %v4484_v1, %v4482_v63  ;;  %v4716_v60 = vsel %vm4634_vm7, %v3442_v30, %v1469_v2  ;;  %v4720_v52 = vsel %vm4634_vm7, %v3443_v50, %v1473_v59  ;;  %v1698_v18 = vor.u32 %v4488_v7, %v4486_v6 }
 0x16b   :  { %v1700_v19 = vrot.slane %v1010_v16, 5  ;;  %v1683_v63 = vrot.slane %v1682_v51, 4  ;;  %v1701_v22 = vrot.slane %v1013_v38, 6  ;;  %1382 = vmatpush1.bf16.msra.mxu0 %v3934_v37  ;;  %v1704_v58 = vshrl.u32 %v4504_v48, 16 }
 0x16c   :  { %v1693_v1 = vrot.slane %v1692_v35, 4  ;;  %v1707_v13 = vrot.slane %v1019_v47, 6  ;;  %v1710_v6 = vrot.slane %v1024_v20, 5  ;;  %v5203_v7 = vshll.u32 %v4528_v46, 16  ;;  %1588 = vmatprep.subr.bf16.mxu0 %v3939_v0 }
 0x16d   :  { %v4745_v12 = vsel %vm4724_vm12, %v1683_v63, %v1688_v49  ;;  %v1702_v30 = vor.u32 %v1701_v22, %v1700_v19  ;;  %v1714_v37 = vshrl.u32 %v4530_v3, 16  ;;  %v1706_v2 = vrot.slane %v1704_v58, 5 }
 0x16e   :  { %v1711_v16 = vrot.slane %v5203_v7, 6  ;;  %v4749_v38 = vsel %vm4724_vm12, %v1693_v1, %v1698_v18  ;;  %v5204_v50 = vshll.u32 %v4530_v3, 16  ;;  %v5205_v49 = vshrl.u32 %v4546_v33, 16 }
 0x16f   :  { %v1703_v0 = vrot.slane %v1702_v30, 4  ;;  %v1716_v51 = vrot.slane %v1714_v37, 5  ;;  %v5206_v18 = vshll.u32 %v4546_v33, 16  ;;  %v1708_v19 = vor.u32 %v1707_v13, %v1706_v2 }
 0x170   :  { %v1712_v20 = vor.u32 %v1711_v16, %v1710_v6  ;;  %v1717_v59 = vrot.slane %v5204_v50, 6  ;;  %1269 = vmatmul.mubr.bf16.gmra.mrb[36].mxu0 %v3399_v17  ;;  %v1720_v35 = vrot.slane %v5205_v49, 5  ;;  %v1724_v22 = vshrl.u32 %v4538_v8, 16 }
 0x171   :  { %v1721_v63 = vrot.slane %v5206_v18, 6  ;;  %1399 = vmatprep.mubr.bf16.mxu0 %v4108_v4  ;;  %v5207_v58 = vshll.u32 %v4538_v8, 16  ;;  %v5208_v17 = vshrl.u32 %v4560_v32, 16  ;;  %v5209_v37 = vshll.u32 %v4560_v32, 16 }
 0x172   :  { %v1713_v1 = vrot.slane %v1712_v20, 4  ;;  %v1718_v7 = vor.u32 %v1717_v59, %v1716_v51  ;;  %v4770_v49 = vsel %vm4724_vm12, %v1703_v0, %v1708_v19  ;;  %v1726_v18 = vrot.slane %v1724_v22, 5 }
 0x173   :  { %v1727_v6 = vrot.slane %v5207_v58, 6  ;;  %v1722_v16 = vor.u32 %v1721_v63, %v1720_v35  ;;  %v1730_v30 = vrot.slane %v5208_v17, 5  ;;  %v1731_v50 = vrot.slane %v5209_v37, 6  ;;  %v3937_v17 = vld [vmem:[#allocation2 + $0x100] ss:$8 sps:$4 sm:$0xff]  }
 0x174   :  { %v1734_v13 = vshrl.u32 %v4562_v28, 16  ;;  %v5210_v2 = vshll.u32 %v4562_v28, 16  ;;  %v4777_v59 = vsel %vm4724_vm12, %v1713_v1, %v1718_v7  ;;  %v5211_v63 = vshrl.u32 %v4590_v11, 16  ;;  %v3942_v1 = vld [vmem:[#allocation2 + $0x114] ss:$8 sps:$4 sm:$0xff]  }
 0x175   :  { %v1723_v51 = vrot.slane %v1722_v16, 4  ;;  %v1732_v35 = vor.u32 %v1731_v50, %v1730_v30  ;;  %v1728_v19 = vor.u32 %v1727_v6, %v1726_v18  ;;  %v5212_v37 = vshll.u32 %v4590_v11, 16 }
 0x176   :  { %v1737_v20 = vrot.slane %v5210_v2, 6  ;;  %v1740_v58 = vrot.slane %v5211_v63, 5  ;;  %v1736_v22 = vrot.slane %v1734_v13, 5  ;;  %v1744_v16 = vshrl.u32 %v4584_v23, 16  ;;  %v3955_v2 = vld [vmem:[#allocation2 + $0x160] ss:$8 sps:$4 sm:$0xff]  }
 0x177   :  { %v1741_v47 = vrot.slane %v5212_v37, 6  ;;  %v1733_v7 = vrot.slane %v1732_v35, 4  ;;  %v5215_v30 = vshll.u32 %v4584_v23, 16  ;;  %v5216_v63 = vshrl.u32 %v4604_v44, 16 }
 0x178   :  { %v4798_v18 = vsel %vm4724_vm12, %v1723_v51, %v1728_v19  ;;  %v1738_v13 = vor.u32 %v1737_v20, %v1736_v22  ;;  %v1751_v0 = vrot.slane %v1083_v15, 6  ;;  %v5217_v35 = vpack.c.bf16 %v4455_v29, %v4423_v55  ;;  %v3940_v15 = vld [vmem:[#allocation2 + $0x110] ss:$8 sps:$4 sm:$0xff]  }
 0x179   :  { %v1747_v50 = vrot.slane %v5215_v30, 6  ;;  %v1750_v6 = vrot.slane %v5216_v63, 5  ;;  %v1742_v37 = vor.u32 %v1741_v47, %v1740_v58  ;;  %v1746_v25 = vrot.slane %v1744_v16, 5  ;;  %v3945_v58 = vld [vmem:[#allocation2 + $0x124] ss:$8 sps:$4 sm:$0xff]  }
 0x17a   :  { %1400 = vmatmul.mubr.bf16.vlgmr.msra.gmra.mrb[24].mxu0 %v5217_v35  ;;  %v1754_v9 = vshrl.u32 %v4606_v10, 16  ;;  %v1757_v30 = vrot.slane %v1089_v57, 6  ;;  %v5218_v63 = vrot.slane %v4425_v56, 6  ;;  %v5219_v51 = vrot.slane %v4431_v62, 10 }
 0x17b   :  { %1589 = vmatpush1.bf16.msra.mxu0 %v3937_v17  ;;  %1409 = vmatprep.mubr.bf16.mxu0 %v4108_v4  ;;  %v4819_v55 = vsel %vm4724_vm12, %v1733_v7, %v1738_v13  ;;  %v1743_v29 = vrot.slane %v1742_v37, 4  ;;  %v1752_v20 = vor.u32 %v1751_v0, %v1750_v6  ;;  %v5220_v57 = vrot.slane %v4466_v40, 6  ;;  %v3948_v37 = vld [vmem:[#allocation2 + $0x134] ss:$8 sps:$4 sm:$0xff]  }
 0x17c   :  { %v4814_v47 = vsel %vm4787_vm13, %v5219_v51, %v5218_v63  ;;  %v5221_v56 = vrot.slane %v4464_v39, 10  ;;  %1590 = vmatprep.subr.bf16.mxu0 %v3942_v1  ;;  %v3466_v17 = vcombine.low %v4798_v18, %v4819_v55  ;;  %v1748_v19 = vor.u32 %v1747_v50, %v1746_v25  ;;  %v4009_v18 = vld [vmem:[#allocation4 + $0x40] sm:$0xff]   ;;  %v4010_v55 = vld [vmem:[#allocation4 + $0x48] sm:$0xff]  }
 0x17d   :  { %v1756_v22 = vrot.slane %v1754_v9, 5  ;;  %v1753_v16 = vrot.slane %v1752_v20, 4  ;;  %v3486_v0 = vrot.slane %v4502_v45, 10  ;;  %v1975_v40 = vrot.slane %v4504_v48, 6  ;;  %v3943_v9 = vld [vmem:[#allocation2 + $0x120] ss:$8 sps:$4 sm:$0xff]  }
 0x17e   :  { %v4827_v62 = vsel %vm4787_vm13, %v5221_v56, %v5220_v57  ;;  %v3487_v39 = vrot.slane %v4528_v46, 10  ;;  %v4838_v6 = vsel %vm4724_vm12, %v1743_v29, %v1748_v19  ;;  %v1979_v13 = vrot.slane %v4530_v3, 6  ;;  %v3946_v29 = vld [vmem:[#allocation2 + $0x130] ss:$8 sps:$4 sm:$0xff]   ;;  %v3951_v20 = vld [vmem:[#allocation2 + $0x144] ss:$8 sps:$4 sm:$0xff]  }
 0x17f   :  { %v3492_v7 = vcombine.low %v4814_v47, %v4827_v62  ;;  %v1758_v1 = vor.u32 %v1757_v30, %v1756_v22  ;;  %v3488_v25 = vrot.slane %v4546_v33, 10  ;;  %1591 = vmatpush1.bf16.msra.mxu0 %v3940_v15  ;;  %v4844_v50 = vsel %vm4787_vm13, %v3486_v0, %v1975_v40  ;;  %v3949_v57 = vld [vmem:[#allocation2 + $0x140] ss:$8 sps:$4 sm:$0xff]   ;;  %v3954_v56 = vld [vmem:[#allocation2 + $0x154] ss:$8 sps:$4 sm:$0xff]  }
 0x180   :  { %v1983_v45 = vrot.slane %v4538_v8, 6  ;;  %v3489_v48 = vrot.slane %v4560_v32, 10  ;;  %v1987_v46 = vrot.slane %v4562_v28, 6  ;;  %1592 = vmatprep.subr.bf16.mxu0 %v3945_v58  ;;  %v4855_v3 = vsel %vm4787_vm13, %v3487_v39, %v1979_v13  ;;  %v3957_v58 = vld [vmem:[#allocation2 + $0x164] ss:$8 sps:$4 sm:$0xff]   ;;  %v4011_v62 = vld [vmem:[#allocation4 + $0x50] sm:$0xff]  }
 0x181   :  { %v4851_v35 = vsel %vm4724_vm12, %v1753_v16, %v1758_v1  ;;  %v3490_v33 = vrot.slane %v4590_v11, 10  ;;  %v1991_v30 = vrot.slane %v4584_v23, 6  ;;  %v3493_v32 = vcombine.low %v4844_v50, %v4855_v3  ;;  %v3960_v19 = vld [vmem:[#allocation2 + $0x174] ss:$8 sps:$4 sm:$0xff]   ;;  %v3958_v16 = vld [vmem:[#allocation2 + $0x170] ss:$8 sps:$4 sm:$0xff]  }
 0x182   :  { %v3467_v8 = vcombine.low %v4838_v6, %v4851_v35  ;;  %v4865_v28 = vsel %vm4787_vm13, %v3488_v25, %v1983_v45  ;;  %v4869_v24 = vsel %vm4787_vm13, %v3489_v48, %v1987_v46  ;;  %v5222_v63 = vpack.c.bf16 %v4521_v36, %v4493_v31  ;;  %v3966_v0 = vld [vmem:[#allocation2 + $0x194] ss:$8 sps:$4 sm:$0xff]   ;;  %v3964_v39 = vld [vmem:[#allocation2 + $0x190] ss:$8 sps:$4 sm:$0xff]   ;;  %v4958_v35 = vld [vmem:[%s5178_s4] sm:$0xff] }
 0x183   :  { %v3494_v23 = vcombine.low %v4865_v28, %v4869_v24  ;;  %v4878_v11 = vsel %vm4787_vm13, %v3490_v33, %v1991_v30  ;;  %v3491_v51 = vrot.slane %v4604_v44, 10  ;;  %v1995_v15 = vrot.slane %v4606_v10, 6  ;;  %1593 = vmatpush1.bf16.msra.mxu0 %v3943_v9  ;;  %v3952_v10 = vld [vmem:[#allocation2 + $0x150] ss:$8 sps:$4 sm:$0xff]   ;;  %v3972_v1 = vld [vmem:[#allocation2 + $0x1b4] ss:$8 sps:$4 sm:$0xff]  }
 0x184   :  { %1410 = vmatmul.mubr.bf16.gmra.mrb[28].mxu0 %v5222_v63  ;;  %1594 = vmatprep.subr.bf16.mxu0 %v3948_v37  ;;  %v5223_v44 = vpack.c.bf16 %v4551_v53, %v4536_v26  ;;  %v5224_v22 = vpack.c.bf16 %v4596_v61, %v4578_v21  ;;  %v3963_v26 = vld [vmem:[#allocation2 + $0x184] ss:$8 sps:$4 sm:$0xff]   ;;  %v3961_v53 = vld [vmem:[#allocation2 + $0x180] ss:$8 sps:$4 sm:$0xff]   ;;  %v5225_v40 = vcombine.low %v4659_v43, %v4667_v34  ;;  %v3970_v13 = vld [vmem:[#allocation2 + $0x1b0] ss:$8 sps:$4 sm:$0xff]  }
 0x185   :  { %1419 = vmatprep.mubr.bf16.mxu0 %v4108_v4  ;;  %v4885_v31 = vsel %vm4787_vm13, %v3491_v51, %v1995_v15  ;;  %v3969_v21 = vld [vmem:[#allocation2 + $0x1a4] ss:$8 sps:$4 sm:$0xff]   ;;  %v3967_v61 = vld [vmem:[#allocation2 + $0x1a0] ss:$8 sps:$4 sm:$0xff]   ;;  %v3978_v25 = vld [vmem:[#allocation2 + $0x1d4] ss:$8 sps:$4 sm:$0xff]   ;;  %v5226_v9 = vcombine.low %v4695_v54, %v4701_v5  ;;  %v5227_v48 = vcombine.low %v4716_v60, %v4720_v52  ;;  %v5228_v33 = vcombine.low %v4745_v12, %v4749_v38 }
 0x186   :  { %v3495_v36 = vcombine.low %v4878_v11, %v4885_v31  ;;  %v3975_v43 = vld [vmem:[#allocation2 + $0x1c4] ss:$8 sps:$4 sm:$0xff]   ;;  %v3973_v34 = vld [vmem:[#allocation2 + $0x1c0] ss:$8 sps:$4 sm:$0xff]   ;;  %v3976_v45 = vld [vmem:[#allocation2 + $0x1d0] ss:$8 sps:$4 sm:$0xff]   ;;  %v5229_v51 = vcombine.low %v4770_v49, %v4777_v59 }
 0x187   :  { %1595 = vmatpush1.bf16.msra.mxu0 %v3946_v29  ;;  %v3982_v46 = vld [vmem:[#allocation2 + $0x1f0] ss:$8 sps:$4 sm:$0xff]   ;;  %v3987_v54 = vld [vmem:[#allocation2 + $0x204] ss:$8 sps:$4 sm:$0xff]   ;;  %v3985_v5 = vld [vmem:[#allocation2 + $0x200] ss:$8 sps:$4 sm:$0xff]  }
 0x188   :  { %1596 = vmatprep.subr.bf16.mxu0 %v3951_v20  ;;  %v3990_v37 = vld [vmem:[#allocation2 + $0x214] ss:$8 sps:$4 sm:$0xff]   ;;  %v3988_v30 = vld [vmem:[#allocation2 + $0x210] ss:$8 sps:$4 sm:$0xff]   ;;  %v3993_v60 = vld [vmem:[#allocation2 + $0x224] ss:$8 sps:$4 sm:$0xff]  }
 0x189   :  { %v3991_v52 = vld [vmem:[#allocation2 + $0x220] ss:$8 sps:$4 sm:$0xff]   ;;  %v3996_v63 = vld [vmem:[#allocation2 + $0x234] ss:$8 sps:$4 sm:$0xff]   ;;  %v3994_v15 = vld [vmem:[#allocation2 + $0x230] ss:$8 sps:$4 sm:$0xff]  }
 0x18a   :  { %v3999_v12 = vld [vmem:[#allocation2 + $0x244] ss:$8 sps:$4 sm:$0xff]   ;;  %v3997_v38 = vld [vmem:[#allocation2 + $0x240] ss:$8 sps:$4 sm:$0xff]   ;;  %v4002_v29 = vld [vmem:[#allocation2 + $0x254] ss:$8 sps:$4 sm:$0xff]  }
 0x18b   :  { %1597 = vmatpush1.bf16.msra.mxu0 %v3949_v57  ;;  %v4000_v20 = vld [vmem:[#allocation2 + $0x250] ss:$8 sps:$4 sm:$0xff]   ;;  %v4005_v49 = vld [vmem:[#allocation2 + $0x264] ss:$8 sps:$4 sm:$0xff]   ;;  %v4003_v59 = vld [vmem:[#allocation2 + $0x260] ss:$8 sps:$4 sm:$0xff]  }
 0x18c   :  { %1420 = vmatmul.mubr.bf16.gmra.mrb[32].mxu0 %v5223_v44  ;;  %1598 = vmatprep.subr.bf16.mxu0 %v3954_v56  ;;  %v4008_v57 = vld [vmem:[#allocation2 + $0x274] ss:$8 sps:$4 sm:$0xff]   ;;  %v4006_v56 = vld [vmem:[#allocation2 + $0x270] ss:$8 sps:$4 sm:$0xff]   ;;  %v4109_v47 = vmov 0.0   ;;  %v4963_v3 = vld [vmem:[%s5178_s4 + $0x8] sm:$0xff] }
 0x18d   :  { %1429 = vmatprep.mubr.bf16.mxu0 %v4108_v4  ;;  %3651 = vmatprep.subr.bf16.mxu1 %v4109_v47  ;;  %v4015_v6 = vld [vmem:[#allocation4 + $0x70] sm:$0xff]   ;;  %v4016_v50 = vld [vmem:[#allocation4 + $0x78] sm:$0xff]   ;;  %vm2676_vm4 = vcmask 1046534  }
 0x18e   :  { %3652 = vmatpush3.bf16.msra.mxu1 %v4009_v18  ;;  %3667 = vmatprep.mubr.msk.bf16.mxu1 %vm4110_vm14, %v4109_v47 }
 0x18f   :  { %1599 = vmatpush1.bf16.msra.mxu0 %v3952_v10  ;;  %3653 = vmatprep.subr.bf16.mxu1 %v4109_v47 }
 0x190   :  { %1600 = vmatprep.subr.bf16.mxu0 %v3957_v58 }
 0x192   :  { %3654 = vmatpush3.bf16.msra.mxu1 %v4010_v55 }
 0x193   :  { %1601 = vmatpush1.bf16.msra.mxu0 %v3955_v2  ;;  %3655 = vmatprep.subr.bf16.mxu1 %v4109_v47 }
 0x194   :  { %1430 = vmatmul.mubr.bf16.gmra.mrb[36].mxu0 %v5224_v22  ;;  %1602 = vmatprep.subr.bf16.mxu0 %v3960_v19 }
 0x195   :  { %1620 = vmatprep.mubr.bf16.mxu0 %v4108_v4 }
 0x196   :  { %3656 = vmatpush3.bf16.msra.mxu1 %v4011_v62 }
 0x197   :  { %1603 = vmatpush1.bf16.msra.mxu0 %v3958_v16  ;;  %3657 = vmatprep.subr.bf16.mxu1 %v4109_v47 }
 0x198   :  { %1873 = vmatprep.subr.bf16.mxu0 %v3963_v26 }
 0x19c   :  { %1621 = vmatmul.mubr.bf16.vlgmr.msra.gmra.mrb[24].mxu0 %v5225_v40 }
 0x19d   :  { %1874 = vmatpush1.bf16.msra.mxu0 %v3961_v53  ;;  %1630 = vmatprep.mubr.bf16.mxu0 %v4108_v4 }
 0x19e   :  { %1875 = vmatprep.subr.bf16.mxu0 %v3966_v0 }
 0x1a1   :  { %1876 = vmatpush1.bf16.msra.mxu0 %v3964_v39 }
 0x1a2   :  { %1877 = vmatprep.subr.bf16.mxu0 %v3969_v21 }
 0x1a4   :  { %1631 = vmatmul.mubr.bf16.gmra.mrb[28].mxu0 %v3445_v42  ;;  %v3981_v42 = vld [vmem:[#allocation2 + $0x1e4] ss:$8 sps:$4 sm:$0xff]  }
 0x1a5   :  { %1878 = vmatpush1.bf16.msra.mxu0 %v3967_v61  ;;  %1640 = vmatprep.mubr.bf16.mxu0 %v4108_v4 }
 0x1a6   :  { %1879 = vmatprep.subr.bf16.mxu0 %v3972_v1 }
 0x1a9   :  { %1880 = vmatpush1.bf16.msra.mxu0 %v3970_v13 }
 0x1aa   :  { %1881 = vmatprep.subr.bf16.mxu0 %v3975_v43 }
 0x1ac   :  { %1641 = vmatmul.mubr.bf16.gmra.mrb[32].mxu0 %v5226_v9 }
 0x1ad   :  { %1882 = vmatpush1.bf16.msra.mxu0 %v3973_v34  ;;  %1650 = vmatprep.mubr.bf16.mxu0 %v4108_v4 }
 0x1ae   :  { %1883 = vmatprep.subr.bf16.mxu0 %v3978_v25 }
 0x1b1   :  { %1884 = vmatpush1.bf16.msra.mxu0 %v3976_v45 }
 0x1b2   :  { %1885 = vmatprep.subr.bf16.mxu0 %v3981_v42 }
 0x1b4   :  { %1651 = vmatmul.mubr.bf16.gmra.mrb[36].mxu0 %v5227_v48 }
 0x1b5   :  { %1886 = vmatpush1.bf16.msra.mxu0 %v3979_v27  ;;  %1905 = vmatprep.mubr.bf16.mxu0 %v4108_v4 }
 0x1b6   :  { %1887 = vmatprep.subr.bf16.mxu0 %v3984_v14 }
 0x1b9   :  { %1888 = vmatpush1.bf16.msra.mxu0 %v3982_v46 }
 0x1ba   :  { %2110 = vmatprep.subr.bf16.mxu0 %v3987_v54 }
 0x1bc   :  { %1906 = vmatmul.mubr.bf16.vlgmr.msra.gmra.mrb[24].mxu0 %v5228_v33 }
 0x1bd   :  { %2111 = vmatpush1.bf16.msra.mxu0 %v3985_v5  ;;  %1915 = vmatprep.mubr.bf16.mxu0 %v4108_v4 }
 0x1be   :  { %2112 = vmatprep.subr.bf16.mxu0 %v3990_v37 }
 0x1c1   :  { %2113 = vmatpush1.bf16.msra.mxu0 %v3988_v30 }
 0x1c2   :  { %2114 = vmatprep.subr.bf16.mxu0 %v3993_v60 }
 0x1c4   :  { %1916 = vmatmul.mubr.bf16.gmra.mrb[28].mxu0 %v5229_v51 }
 0x1c5   :  { %2115 = vmatpush1.bf16.msra.mxu0 %v3991_v52  ;;  %1925 = vmatprep.mubr.bf16.mxu0 %v4108_v4 }
 0x1c6   :  { %2116 = vmatprep.subr.bf16.mxu0 %v3996_v63 }
 0x1c9   :  { %2117 = vmatpush1.bf16.msra.mxu0 %v3994_v15 }
 0x1ca   :  { %2118 = vmatprep.subr.bf16.mxu0 %v3999_v12 }
 0x1cc   :  { %1926 = vmatmul.mubr.bf16.gmra.mrb[32].mxu0 %v3466_v17  ;;  %v4013_v17 = vld [vmem:[#allocation4 + $0x60] sm:$0xff]  }
 0x1cd   :  { %2119 = vmatpush1.bf16.msra.mxu0 %v3997_v38  ;;  %1935 = vmatprep.mubr.bf16.mxu0 %v4108_v4 }
 0x1ce   :  { %2120 = vmatprep.subr.bf16.mxu0 %v4002_v29 }
 0x1d1   :  { %2121 = vmatpush1.bf16.msra.mxu0 %v4000_v20 }
 0x1d2   :  { %2122 = vmatprep.subr.bf16.mxu0 %v4005_v49 }
 0x1d4   :  { %1936 = vmatmul.mubr.bf16.gmra.mrb[36].mxu0 %v3467_v8 }
 0x1d5   :  { %2123 = vmatpush1.bf16.msra.mxu0 %v4003_v59  ;;  %2142 = vmatprep.mubr.bf16.mxu0 %v4108_v4 }
 0x1d6   :  { %2124 = vmatprep.subr.bf16.mxu0 %v4008_v57 }
 0x1d9   :  { %2125 = vmatpush1.bf16.msra.mxu0 %v4006_v56 }
 0x1dc   :  { %2143 = vmatmul.mubr.bf16.vlgmr.msra.gmra.mrb[24].mxu0 %v3492_v7  ;;  %v4014_v7 = vld [vmem:[#allocation4 + $0x68] sm:$0xff]  }
 0x1dd   :  { %2152 = vmatprep.mubr.bf16.mxu0 %v4108_v4 }
 0x1e4   :  { %2153 = vmatmul.mubr.bf16.gmra.mrb[28].mxu0 %v3493_v32  ;;  %v4968_v32 = vld [vmem:[%s5179_s5] sm:$0xff] }
 0x1e5   :  { %2162 = vmatprep.mubr.bf16.mxu0 %v4108_v4 }
 0x1ec   :  { %2163 = vmatmul.mubr.bf16.gmra.mrb[32].mxu0 %v3494_v23  ;;  %v4974_v23 = vld [vmem:[%s5179_s5 + $0x8] sm:$0xff] }
 0x1ed   :  { %2172 = vmatprep.mubr.bf16.mxu0 %v4108_v4  ;;  %v4012_v4 = vld [vmem:[#allocation4 + $0x58] sm:$0xff]  }
 0x1ee   :  { %3658 = vmatpush3.bf16.msra.mxu1 %v4012_v4 }
 0x1ef   :  { %3659 = vmatprep.subr.bf16.mxu1 %v4109_v47 }
 0x1f2   :  { %3660 = vmatpush3.bf16.msra.mxu1 %v4013_v17 }
 0x1f3   :  { %3661 = vmatprep.subr.bf16.mxu1 %v4109_v47 }
 0x1f4   :  { %2173 = vmatmul.mubr.bf16.gmra.mrb[36].mxu0 %v3495_v36 }
 0x1f6   :  { %3662 = vmatpush3.bf16.msra.mxu1 %v4014_v7 }
 0x1f7   :  { %3663 = vmatprep.subr.bf16.mxu1 %v4109_v47 }
 0x1fa   :  { %3664 = vmatpush3.bf16.msra.mxu1 %v4015_v6 }
 0x1fb   :  { %3665 = vmatprep.subr.bf16.mxu1 %v4109_v47 }
 0x1fe   :  { %3666 = vmatpush3.bf16.msra.mxu1 %v4016_v50 }
 0x1ff   :  { %3671 = vmatprep.subr.bf16.mxu1 %v4109_v47 }
 0x2af   :  { %v2144_v8 = vpop.f32.mrb[24].mxu0 }
 0x2b0   :  { %v2201_v28 = vmul.f32 %v4958_v35, %v2144_v8  ;;  %v2146_v24 = vpop.f32.mrb[25].mxu0 }
 0x2b1   :  { %v2202_v11 = vmul.f32 %v4963_v3, %v2146_v24  ;;  %v2148_v31 = vpop.f32.mrb[26].mxu0 }
 0x2b2   :  { %v2219_v36 = vadd.f32 %v4968_v32, %v2201_v28  ;;  %v2203_v44 = vmul.f32 %v4958_v35, %v2148_v31  ;;  %v2150_v10 = vpop.f32.mrb[27].mxu0 }
 0x2b3   :  { %v2220_v58 = vadd.f32 %v4974_v23, %v2202_v11  ;;  %v2204_v2 = vmul.f32 %v4963_v3, %v2150_v10 }
 0x2b4   :  { %v2221_v19 = vadd.f32 %v4968_v32, %v2203_v44 }
 0x2b5   :  { %v2235_v22 = vmax.f32 %v2219_v36, %v2220_v58  ;;  %v2222_v16 = vadd.f32 %v4974_v23, %v2204_v2 }
 0x2b7   :  { %v2251_v26 = vcombine.high %v2235_v22, %v2235_v22  ;;  %v2258_v53 = vrot.slane %v2235_v22, %v4298_v41  ;;  %v2236_v0 = vmax.f32 %v2221_v19, %v2222_v16  ;;  %v2154_v40 = vpop.f32.mrb[28].mxu0 }
 0x2b8   :  { %v2205_v39 = vmul.f32 %v4958_v35, %v2154_v40  ;;  %v2156_v21 = vpop.f32.mrb[29].mxu0 }
 0x2b9   :  { %v2265_v61 = vrot.slane %v2251_v26, %v4298_v41  ;;  %v2266_v1 = vcombine.high %v2258_v53, %v2258_v53  ;;  %v3512_v13 = vrot.slane %v2258_v53, 9  ;;  %v2268_v43 = vcombine.high %v2236_v0, %v2236_v0  ;;  %v2158_v34 = vpop.f32.mrb[30].mxu0 }
 0x2ba   :  { %v2275_v25 = vrot.slane %v2236_v0, %v4298_v41  ;;  %v2223_v9 = vadd.f32 %v4968_v32, %v2205_v39  ;;  %v2206_v45 = vmul.f32 %v4963_v3, %v2156_v21  ;;  %v2207_v42 = vmul.f32 %v4958_v35, %v2158_v34  ;;  %v2160_v27 = vpop.f32.mrb[31].mxu0 }
 0x2bb   :  { %v2267_v14 = vcombine.high %v2265_v61, %v2265_v61  ;;  %v3513_v48 = vrot.slane %v2266_v1, 9  ;;  %v3514_v46 = vrot.slane %v2265_v61, 9  ;;  %v2515_v54 = vmax.f32 %v2258_v53, %v3512_v13 }
 0x2bc   :  { %v2282_v5 = vrot.slane %v2268_v43, %v4298_v41  ;;  %v2283_v37 = vcombine.high %v2275_v25, %v2275_v25  ;;  %v3516_v33 = vrot.slane %v2275_v25, 9  ;;  %v2224_v30 = vadd.f32 %v4974_v23, %v2206_v45 }
 0x2bd   :  { %v3515_v60 = vrot.slane %v2267_v14, 9  ;;  %v2516_v52 = vmax.f32 %v2266_v1, %v3513_v48  ;;  %v2517_v63 = vmax.f32 %v2265_v61, %v3514_v46  ;;  %v2547_v51 = vmax.f32 %v2515_v54, 0.0 }
 0x2be   :  { %v2284_v15 = vcombine.high %v2282_v5, %v2282_v5  ;;  %v3517_v12 = vrot.slane %v2283_v37, 9  ;;  %v3518_v38 = vrot.slane %v2282_v5, 9  ;;  %v2519_v29 = vmax.f32 %v2275_v25, %v3516_v33 }
 0x2bf   :  { %v2518_v20 = vmax.f32 %v2267_v14, %v3515_v60  ;;  %v2548_v49 = vmax.f32 %v2516_v52, 0.0  ;;  %v2549_v59 = vmax.f32 %v2517_v63, 0.0  ;;  %v2579_v57 = vpack.c.bf16 %v2547_v51, %v2547_v51  ;;  %v2164_v56 = vpop.f32.mrb[32].mxu0 }
 0x2c0   :  { %v3519_v18 = vrot.slane %v2284_v15, 9  ;;  %v2520_v55 = vmax.f32 %v2283_v37, %v3517_v12  ;;  %v2521_v62 = vmax.f32 %v2282_v5, %v3518_v38  ;;  %v2551_v4 = vmax.f32 %v2519_v29, 0.0  ;;  %v2166_v17 = vpop.f32.mrb[33].mxu0 }
 0x2c1   :  { %v2550_v7 = vmax.f32 %v2518_v20, 0.0  ;;  %v2580_v6 = vpack.c.bf16 %v2548_v49, %v2548_v49  ;;  %v2581_v50 = vpack.c.bf16 %v2549_v59, %v2549_v59  ;;  %v2779_v8 = vunpack.c.l.b16 %v2579_v57  ;;  %v2168_v28 = vpop.f32.mrb[34].mxu0 }
 0x2c2   :  { %v2522_v24 = vmax.f32 %v2284_v15, %v3519_v18  ;;  %v2552_v11 = vmax.f32 %v2520_v55, 0.0  ;;  %v2553_v31 = vmax.f32 %v2521_v62, 0.0  ;;  %v2583_v36 = vpack.c.bf16 %v2551_v4, %v2551_v4  ;;  %v4992_v44 = vpop.f32.mrb[35].mxu0 }
 0x2c3   :  { %v4994_v10 = vpack.c.bf16 %v2550_v7, %v2550_v7  ;;  %v2652_v58 = vunpack.c.l.b16 %v2580_v6  ;;  %v2916_v2 = vunpack.c.l.b16 %v2581_v50  ;;  %v2237_v19 = vmax.f32 %v2223_v9, %v2224_v30 }
 0x2c4   :  { %v2554_v22 = vmax.f32 %v2522_v24, 0.0  ;;  %v2584_v16 = vpack.c.bf16 %v2552_v11, %v2552_v11  ;;  %v2585_v26 = vpack.c.bf16 %v2553_v31, %v2553_v31  ;;  %v2780_v53 = vunpack.c.l.b16 %v2583_v36 }
 0x2c5   :  { %v3054_v0 = vunpack.c.l.b16 %v4994_v10  ;;  %v2285_v40 = vcombine.high %v2237_v19, %v2237_v19  ;;  %v2292_v39 = vrot.slane %v2237_v19, %v4298_v41  ;;  %v2225_v21 = vadd.f32 %v4968_v32, %v2207_v42 }
 0x2c6   :  { %v2586_v61 = vpack.c.bf16 %v2554_v22, %v2554_v22  ;;  %v2653_v1 = vunpack.c.l.b16 %v2584_v16  ;;  %v2787_v13 = vrot.slane %v2780_v53, 7  ;;  %v2917_v43 = vunpack.c.l.b16 %v2585_v26 }
 0x2c7   :  { %v2299_v34 = vrot.slane %v2285_v40, %v4298_v41  ;;  %v2300_v25 = vcombine.high %v2292_v39, %v2292_v39  ;;  %v3520_v45 = vrot.slane %v2292_v39, 9  ;;  %v2208_v9 = vmul.f32 %v4963_v3, %v2160_v27  ;;  %v5001_v14 = vpop.f32.mrb[36].mxu0 }
 0x2c8   :  { %v2660_v48 = vrot.slane %v2653_v1, 7  ;;  %v2788_v46 = vsel %vm2661_vm15, %v2787_v13, %v2779_v8  ;;  %v2924_v54 = vrot.slane %v2917_v43, 7  ;;  %v3055_v5 = vunpack.c.l.b16 %v2586_v61  ;;  %v5004_v37 = vpop.f32.mrb[37].mxu0 }
 0x2c9   :  { %v2301_v42 = vcombine.high %v2299_v34, %v2299_v34  ;;  %v3521_v33 = vrot.slane %v2300_v25, 9  ;;  %v3522_v30 = vrot.slane %v2299_v34, 9  ;;  %v2523_v60 = vmax.f32 %v2292_v39, %v3520_v45  ;;  %v5006_v52 = vpop.f32.mrb[38].mxu0 }
 0x2ca   :  { %v2662_v63 = vsel %vm2661_vm15, %v2660_v48, %v2652_v58  ;;  %v5010_v27 = vsel %vm2661_vm15, %v2924_v54, %v2916_v2  ;;  %v5012_v51 = vrot.slane %v3055_v5, 7  ;;  %v2226_v15 = vadd.f32 %v4974_v23, %v2208_v9  ;;  %v5015_v12 = vpop.f32.mrb[39].mxu0 }
 0x2cb   :  { %v3523_v38 = vrot.slane %v2301_v42, 9  ;;  %v2524_v29 = vmax.f32 %v2300_v25, %v3521_v33  ;;  %v2525_v20 = vmax.f32 %v2299_v34, %v3522_v30  ;;  %v2555_v49 = vmax.f32 %v2523_v60, 0.0 }
 0x2cc   :  { %v2238_v59 = vmax.f32 %v2225_v21, %v2226_v15  ;;  %v2209_v57 = vmul.f32 %v4958_v35, %v2164_v56  ;;  %v2210_v18 = vmul.f32 %v4963_v3, %v2166_v17  ;;  %v2211_v55 = vmul.f32 %v4958_v35, %v2168_v28 }
 0x2cd   :  { %v2526_v62 = vmax.f32 %v2301_v42, %v3523_v38  ;;  %v2556_v4 = vmax.f32 %v2524_v29, 0.0  ;;  %v2557_v7 = vmax.f32 %v2525_v20, 0.0  ;;  %v2587_v6 = vpack.c.bf16 %v2555_v49, %v2555_v49 }
 0x2ce   :  { %v2302_v50 = vcombine.high %v2238_v59, %v2238_v59  ;;  %v2309_v8 = vrot.slane %v2238_v59, %v4298_v41  ;;  %v2227_v24 = vadd.f32 %v4968_v32, %v2209_v57  ;;  %v2228_v11 = vadd.f32 %v4974_v23, %v2210_v18 }
 0x2cf   :  { %v2558_v31 = vmax.f32 %v2526_v62, 0.0  ;;  %v2588_v36 = vpack.c.bf16 %v2556_v4, %v2556_v4  ;;  %v2589_v58 = vpack.c.bf16 %v2557_v7, %v2557_v7  ;;  %v2781_v2 = vunpack.c.l.b16 %v2587_v6 }
 0x2d0   :  { %v2316_v56 = vrot.slane %v2302_v50, %v4298_v41  ;;  %v2317_v17 = vcombine.high %v2309_v8, %v2309_v8  ;;  %v3524_v19 = vrot.slane %v2309_v8, 9  ;;  %v2239_v28 = vmax.f32 %v2227_v24, %v2228_v11 }
 0x2d1   :  { %v2590_v22 = vpack.c.bf16 %v2558_v31, %v2558_v31  ;;  %v2654_v16 = vunpack.c.l.b16 %v2588_v36  ;;  %v2789_v26 = vrot.slane %v2781_v2, 6  ;;  %v2918_v53 = vunpack.c.l.b16 %v2589_v58 }
 0x2d2   :  { %v2318_v40 = vcombine.high %v2316_v56, %v2316_v56  ;;  %v3525_v39 = vrot.slane %v2317_v17, 9  ;;  %v3526_v21 = vrot.slane %v2316_v56, 9  ;;  %v2527_v61 = vmax.f32 %v2309_v8, %v3524_v19 }
 0x2d3   :  { %v2663_v1 = vrot.slane %v2654_v16, 6  ;;  %v5025_v13 = vsel %vm2664_vm0, %v2789_v26, %v2788_v46  ;;  %v5027_v43 = vrot.slane %v2918_v53, 6  ;;  %v3056_v34 = vunpack.c.l.b16 %v2590_v22 }
 0x2d4   :  { %v3527_v25 = vrot.slane %v2318_v40, 9  ;;  %v2528_v45 = vmax.f32 %v2317_v17, %v3525_v39  ;;  %v2529_v9 = vmax.f32 %v2316_v56, %v3526_v21  ;;  %v2559_v48 = vmax.f32 %v2527_v61, 0.0 }
 0x2d5   :  { %v2665_v54 = vsel %vm2664_vm0, %v2663_v1, %v2662_v63  ;;  %v5030_v5 = vrot.slane %v3056_v34, 6  ;;  %v2319_v42 = vcombine.high %v2239_v28, %v2239_v28  ;;  %v2326_v33 = vrot.slane %v2239_v28, %v4298_v41 }
 0x2d6   :  { %v2530_v30 = vmax.f32 %v2318_v40, %v3527_v25  ;;  %v2560_v60 = vmax.f32 %v2528_v45, 0.0  ;;  %v2561_v15 = vmax.f32 %v2529_v9, 0.0  ;;  %v2591_v46 = vpack.c.bf16 %v2559_v48, %v2559_v48 }
 0x2d7   :  { %v2333_v38 = vrot.slane %v2319_v42, %v4298_v41  ;;  %v2334_v29 = vcombine.high %v2326_v33, %v2326_v33  ;;  %v3528_v20 = vrot.slane %v2326_v33, 9  ;;  %v2229_v49 = vadd.f32 %v4968_v32, %v2211_v55 }
 0x2d8   :  { %v2562_v59 = vmax.f32 %v2530_v30, 0.0  ;;  %v2592_v57 = vpack.c.bf16 %v2560_v60, %v2560_v60  ;;  %v2593_v18 = vpack.c.bf16 %v2561_v15, %v2561_v15  ;;  %v2782_v63 = vunpack.c.l.b16 %v2591_v46 }
 0x2d9   :  { %v2335_v62 = vcombine.high %v2333_v38, %v2333_v38  ;;  %v3529_v4 = vrot.slane %v2334_v29, 9  ;;  %v3530_v7 = vrot.slane %v2333_v38, 9  ;;  %v2531_v6 = vmax.f32 %v2326_v33, %v3528_v20 }
 0x2da   :  { %v2594_v50 = vpack.c.bf16 %v2562_v59, %v2562_v59  ;;  %v2655_v8 = vunpack.c.l.b16 %v2592_v57  ;;  %v2791_v24 = vrot.slane %v2782_v63, 5  ;;  %v2919_v11 = vunpack.c.l.b16 %v2593_v18 }
 0x2db   :  { %v3531_v31 = vrot.slane %v2335_v62, 9  ;;  %v2532_v36 = vmax.f32 %v2334_v29, %v3529_v4  ;;  %v2533_v58 = vmax.f32 %v2333_v38, %v3530_v7  ;;  %v2563_v2 = vmax.f32 %v2531_v6, 0.0 }
 0x2dc   :  { %v2666_v56 = vrot.slane %v2655_v8, 5  ;;  %v5035_v17 = vrot.slane %v2919_v11, 5  ;;  %v3057_v55 = vunpack.c.l.b16 %v2594_v50  ;;  %v2212_v19 = vmul.f32 %v4963_v3, %v4992_v44 }
 0x2dd   :  { %v2534_v28 = vmax.f32 %v2335_v62, %v3531_v31  ;;  %v2564_v22 = vmax.f32 %v2532_v36, 0.0  ;;  %v2565_v16 = vmax.f32 %v2533_v58, 0.0  ;;  %v2595_v26 = vpack.c.bf16 %v2563_v2, %v2563_v2 }
 0x2de   :  { %v2668_v53 = vsel %vm2667_vm1, %v2666_v56, %v2665_v54  ;;  %v5040_v40 = vrot.slane %v3057_v55, 5  ;;  %v2230_v39 = vadd.f32 %v4974_v23, %v2212_v19  ;;  %v2213_v21 = vmul.f32 %v4958_v35, %v5001_v14 }
 0x2df   :  { %v2566_v61 = vmax.f32 %v2534_v28, 0.0  ;;  %v2596_v1 = vpack.c.bf16 %v2564_v22, %v2564_v22  ;;  %v2597_v34 = vpack.c.bf16 %v2565_v16, %v2565_v16  ;;  %v2783_v25 = vunpack.c.l.b16 %v2595_v26 }
 0x2e0   :  { %v2240_v45 = vmax.f32 %v2229_v49, %v2230_v39  ;;  %v2231_v44 = vadd.f32 %v4968_v32, %v2213_v21  ;;  %v2214_v9 = vmul.f32 %v4963_v3, %v5004_v37  ;;  %v2215_v48 = vmul.f32 %v4958_v35, %v5006_v52 }
 0x2e1   :  { %v2598_v54 = vpack.c.bf16 %v2566_v61, %v2566_v61  ;;  %v2656_v42 = vunpack.c.l.b16 %v2596_v1  ;;  %v2793_v33 = vrot.slane %v2783_v25, 4  ;;  %v2920_v30 = vunpack.c.l.b16 %v2597_v34 }
 0x2e2   :  { %v2336_v60 = vcombine.high %v2240_v45, %v2240_v45  ;;  %v2343_v14 = vrot.slane %v2240_v45, %v4298_v41  ;;  %v2232_v15 = vadd.f32 %v4974_v23, %v2214_v9  ;;  %v2233_v46 = vadd.f32 %v4968_v32, %v2215_v48 }
 0x2e3   :  { %v2669_v38 = vrot.slane %v2656_v42, 4  ;;  %v5053_v29 = vrot.slane %v2920_v30, 4  ;;  %v3058_v20 = vunpack.c.l.b16 %v2598_v54  ;;  %v2216_v37 = vmul.f32 %v4963_v3, %v5015_v12 }
 0x2e4   :  { %v2350_v35 = vrot.slane %v2336_v60, %v4298_v41  ;;  %v2351_v52 = vcombine.high %v2343_v14, %v2343_v14  ;;  %v3532_v49 = vrot.slane %v2343_v14, 9  ;;  %v2241_v59 = vmax.f32 %v2231_v44, %v2232_v15 }
 0x2e5   :  { %v5058_v57 = vrot.slane %v3058_v20, 4  ;;  %v2234_v18 = vadd.f32 %v4974_v23, %v2216_v37  ;;  %v2671_v63 = vsel %vm2670_vm2, %v2669_v38, %v2668_v53  ;;  %v2792_v32 = vsel %vm2667_vm1, %v2791_v24, %v5025_v13 }
 0x2e6   :  { %v2352_v62 = vcombine.high %v2350_v35, %v2350_v35  ;;  %v3533_v4 = vrot.slane %v2351_v52, 9  ;;  %v3534_v7 = vrot.slane %v2350_v35, 9  ;;  %v2535_v6 = vmax.f32 %v2343_v14, %v3532_v49 }
 0x2e7   :  { %v2353_v50 = vcombine.high %v2241_v59, %v2241_v59  ;;  %v2360_v3 = vrot.slane %v2241_v59, %v4298_v41  ;;  %v2242_v12 = vmax.f32 %v2233_v46, %v2234_v18  ;;  %v2794_v8 = vsel %vm2670_vm2, %v2793_v33, %v2792_v32 }
 0x2e8   :  { %v3535_v11 = vrot.slane %v2352_v62, 9  ;;  %v2536_v31 = vmax.f32 %v2351_v52, %v3533_v4  ;;  %v2537_v36 = vmax.f32 %v2350_v35, %v3534_v7  ;;  %v2567_v58 = vmax.f32 %v2535_v6, 0.0 }
 0x2e9   :  { %v2367_v23 = vrot.slane %v2353_v50, %v4298_v41  ;;  %v2368_v2 = vcombine.high %v2360_v3, %v2360_v3  ;;  %v3536_v56 = vrot.slane %v2360_v3, 9  ;;  %v2370_v13 = vcombine.high %v2242_v12, %v2242_v12 }
 0x2ea   :  { %v2538_v24 = vmax.f32 %v2352_v62, %v3535_v11  ;;  %v2568_v55 = vmax.f32 %v2536_v31, 0.0  ;;  %v2569_v19 = vmax.f32 %v2537_v36, 0.0  ;;  %v2599_v28 = vpack.c.bf16 %v2567_v58, %v2567_v58 }
 0x2eb   :  { %v2369_v22 = vcombine.high %v2367_v23, %v2367_v23  ;;  %v3537_v16 = vrot.slane %v2368_v2, 9  ;;  %v3538_v26 = vrot.slane %v2367_v23, 9  ;;  %v2539_v53 = vmax.f32 %v2360_v3, %v3536_v56 }
 0x2ec   :  { %v2570_v39 = vmax.f32 %v2538_v24, 0.0  ;;  %v2600_v21 = vpack.c.bf16 %v2568_v55, %v2568_v55  ;;  %v2601_v61 = vpack.c.bf16 %v2569_v19, %v2569_v19  ;;  %v2784_v1 = vunpack.c.l.b16 %v2599_v28 }
 0x2ed   :  { %v3539_v34 = vrot.slane %v2369_v22, 9  ;;  %v2540_v25 = vmax.f32 %v2368_v2, %v3537_v16  ;;  %v2541_v45 = vmax.f32 %v2367_v23, %v3538_v26  ;;  %v2571_v44 = vmax.f32 %v2539_v53, 0.0 }
 0x2ee   :  { %v2602_v9 = vpack.c.bf16 %v2570_v39, %v2570_v39  ;;  %v2657_v48 = vunpack.c.l.b16 %v2600_v21  ;;  %v2795_v54 = vrot.slane %v2784_v1, 3  ;;  %v2921_v42 = vunpack.c.l.b16 %v2601_v61 }
 0x2ef   :  { %v2542_v33 = vmax.f32 %v2369_v22, %v3539_v34  ;;  %v2572_v30 = vmax.f32 %v2540_v25, 0.0  ;;  %v2573_v60 = vmax.f32 %v2541_v45, 0.0  ;;  %v2603_v14 = vpack.c.bf16 %v2571_v44, %v2571_v44 }
 0x2f0   :  { %v2672_v15 = vrot.slane %v2657_v48, 3  ;;  %v2932_v46 = vrot.slane %v2921_v42, 3  ;;  %v3059_v38 = vunpack.c.l.b16 %v2602_v9  ;;  %v2377_v20 = vrot.slane %v2242_v12, %v4298_v41 }
 0x2f1   :  { %v2574_v37 = vmax.f32 %v2542_v33, 0.0  ;;  %v2604_v35 = vpack.c.bf16 %v2572_v30, %v2572_v30  ;;  %v2605_v52 = vpack.c.bf16 %v2573_v60, %v2573_v60  ;;  %v2785_v49 = vunpack.c.l.b16 %v2603_v14  ;;  %v4017_v60 = vld [vmem:[#allocation4] sm:$0xff]  }
 0x2f2   :  { %v2384_v59 = vrot.slane %v2370_v13, %v4298_v41  ;;  %v2385_v18 = vcombine.high %v2377_v20, %v2377_v20  ;;  %v3540_v32 = vrot.slane %v2377_v20, 9  ;;  %v2674_v62 = vsel %vm2673_vm3, %v2672_v15, %v2671_v63 }
 0x2f3   :  { %v2658_v4 = vunpack.c.l.b16 %v2604_v35  ;;  %v2797_v7 = vrot.slane %v2785_v49, 2  ;;  %v2922_v6 = vunpack.c.l.b16 %v2605_v52  ;;  %v2796_v50 = vsel %vm2673_vm3, %v2795_v54, %v2794_v8  ;;  %v4021_v35 = vld [vmem:[#allocation4 + $0x20] sm:$0xff]   ;;  %v4022_v52 = vld [vmem:[#allocation4 + $0x28] sm:$0xff]   ;;  %v4023_v49 = vld [vmem:[#allocation4 + $0x30] sm:$0xff]  }
 0x2f4   :  { %v2386_v3 = vcombine.high %v2384_v59, %v2384_v59  ;;  %v3541_v11 = vrot.slane %v2385_v18, 9  ;;  %v3542_v31 = vrot.slane %v2384_v59, 9  ;;  %v2543_v12 = vmax.f32 %v2377_v20, %v3540_v32  ;;  %v4019_v20 = vld [vmem:[#allocation4 + $0x10] sm:$0xff]  }
 0x2f5   :  { %v2675_v36 = vrot.slane %v2658_v4, 2  ;;  %v2798_v58 = vsel %vm2676_vm4, %v2797_v7, %v2796_v50  ;;  %v2927_v41 = vsel %vm2664_vm0, %v5027_v43, %v5010_v27  ;;  %v2934_v23 = vrot.slane %v2922_v6, 2  ;;  %v4027_v4 = vld [vmem:[#allocation4 + $0x90] sm:$0xff]   ;;  %v4028_v7 = vld [vmem:[#allocation4 + $0x98] sm:$0xff]   ;;  %v4029_v6 = vld [vmem:[#allocation4 + $0xa0] sm:$0xff]  }
 0x2f6   :  { %v3543_v2 = vrot.slane %v2386_v3, 9  ;;  %v2544_v63 = vmax.f32 %v2385_v18, %v3541_v11  ;;  %v2545_v56 = vmax.f32 %v2384_v59, %v3542_v31  ;;  %v2575_v13 = vmax.f32 %v2543_v12, 0.0  ;;  %v4024_v59 = vld [vmem:[#allocation4 + $0x38] sm:$0xff]   ;;  %v4025_v18 = vld [vmem:[#allocation4 + $0x80] sm:$0xff]   ;;  %v4030_v50 = vld [vmem:[#allocation4 + $0xa8] sm:$0xff]  }
 0x2f7   :  { %v2677_v24 = vsel %vm2676_vm4, %v2675_v36, %v2674_v62  ;;  %v2929_v8 = vsel %vm2667_vm1, %v5035_v17, %v2927_v41  ;;  %v2606_v55 = vpack.c.bf16 %v2574_v37, %v2574_v37  ;;  %v3063_v19 = vsel %vm2661_vm15, %v5012_v51, %v3054_v0  ;;  %v4020_v37 = vld [vmem:[#allocation4 + $0x18] sm:$0xff]   ;;  %v4026_v62 = vld [vmem:[#allocation4 + $0x88] sm:$0xff]   ;;  %v4033_v31 = vld [vmem:[#allocation4 + $0xc0] sm:$0xff]  }
 0x2f8   :  { %v2576_v28 = vmax.f32 %v2544_v63, 0.0  ;;  %v2577_v22 = vmax.f32 %v2545_v56, 0.0  ;;  %v2607_v16 = vpack.c.bf16 %v2575_v13, %v2575_v13  ;;  %v2931_v27 = vsel %vm2670_vm2, %v5053_v29, %v2929_v8  ;;  %v4032_v11 = vld [vmem:[#allocation4 + $0xb8] sm:$0xff]   ;;  %v4034_v36 = vld [vmem:[#allocation4 + $0xc8] sm:$0xff]   ;;  %v4039_v63 = vld [vmem:[#allocation4 + $0xf0] sm:$0xff]  }
 0x2f9   :  { %v2933_v43 = vsel %vm2673_vm3, %v2932_v46, %v2931_v27  ;;  %v2546_v26 = vmax.f32 %v2386_v3, %v3543_v2  ;;  %v3060_v53 = vunpack.c.l.b16 %v2606_v55  ;;  %v3065_v39 = vsel %vm2664_vm0, %v5030_v5, %v3063_v19  ;;  %v4031_v3 = vld [vmem:[#allocation4 + $0xb0] sm:$0xff]   ;;  %v4036_v41 = vld [vmem:[#allocation4 + $0xd8] sm:$0xff]   ;;  %v4038_v2 = vld [vmem:[#allocation4 + $0xe8] sm:$0xff]  }
 0x2fa   :  { %v2608_v17 = vpack.c.bf16 %v2576_v28, %v2576_v28  ;;  %v2786_v21 = vunpack.c.l.b16 %v2607_v16  ;;  %v2609_v61 = vpack.c.bf16 %v2577_v22, %v2577_v22  ;;  %v2935_v10 = vsel %vm2676_vm4, %v2934_v23, %v2933_v43  ;;  %v4037_v23 = vld [vmem:[#allocation4 + $0xe0] sm:$0xff]   ;;  %v4040_v56 = vld [vmem:[#allocation4 + $0xf8] sm:$0xff]   ;;  %v4042_v8 = vld [vmem:[%s5182_s8 + $0x8] sm:$0xff]  }
 0x2fb   :  { %v2578_v1 = vmax.f32 %v2546_v26, 0.0  ;;  %v3067_v0 = vsel %vm2667_vm1, %v5040_v40, %v3065_v39  ;;  %v3070_v51 = vrot.slane %v3059_v38, 3  ;;  %v3072_v34 = vrot.slane %v3060_v53, 2  ;;  %v4018_v38 = vld [vmem:[#allocation4 + $0x8] sm:$0xff]   ;;  %v4043_v55 = vld [vmem:[%s5182_s8 + $0x10] sm:$0xff]   ;;  %v4044_v19 = vld [vmem:[%s5182_s8 + $0x18] sm:$0xff]  }
 0x2fc   :  { %v2659_v25 = vunpack.c.l.b16 %v2608_v17  ;;  %v2799_v29 = vrot.slane %v2786_v21, 1  ;;  %v2923_v45 = vunpack.c.l.b16 %v2609_v61  ;;  %v3069_v44 = vsel %vm2670_vm2, %v5058_v57, %v3067_v0  ;;  %v4045_v28 = vld [vmem:[%s5182_s8 + $0x20] sm:$0xff]   ;;  %v4046_v22 = vld [vmem:[%s5182_s8 + $0x28] sm:$0xff]   ;;  %v4047_v16 = vld [vmem:[%s5182_s8 + $0x30] sm:$0xff]  }
 0x2fd   :  { %v2610_v9 = vpack.c.bf16 %v2578_v1, %v2578_v1  ;;  %v3071_v5 = vsel %vm2673_vm3, %v3070_v51, %v3069_v44  ;;  %v4048_v27 = vld [vmem:[%s5182_s8 + $0x38] sm:$0xff]  }
 0x2fe   :  { %v2678_v48 = vrot.slane %v2659_v25, 1  ;;  %v2800_v54 = vsel %vm2679_vm5, %v2799_v29, %v2798_v58  ;;  %v2936_v42 = vrot.slane %v2923_v45, 1  ;;  %v3073_v33 = vsel %vm2676_vm4, %v3072_v34, %v3071_v5  ;;  %v4035_v58 = vld [vmem:[#allocation4 + $0xd0] sm:$0xff]  }
 0x2ff   :  { %v3061_v30 = vunpack.c.l.b16 %v2610_v9  ;;  %v2801_v32 = vpack.c.b16 %v2800_v54, %v2800_v54 }
 0x300   :  { %v2680_v40 = vsel %vm2679_vm5, %v2678_v48, %v2677_v24  ;;  %v2937_v14 = vsel %vm2679_vm5, %v2936_v42, %v2935_v10  ;;  %v4041_v24 = vld [vmem:[%s5182_s8] sm:$0xff]  }
 0x301   :  { %v2681_v15 = vpack.c.b16 %v2680_v40, %v2680_v40  ;;  %v3074_v46 = vrot.slane %v3061_v30, 1  ;;  %v2938_v12 = vpack.c.b16 %v2937_v14, %v2937_v14  ;;  %v3577_v30 = vld [vmem:[%s5183_s9] ss:$0 sm:$0xff] }
 0x303   :  { %3668 = vmatmul.mubr.bf16.vlgmr.msra.gmra.mrb[24].mxu1 %v2681_v15  ;;  %v5098_v57 = vsel %vm2679_vm5, %v3074_v46, %v3073_v33 }
 0x304   :  { %3672 = vmatpush3.bf16.msra.mxu1 %v4017_v60  ;;  %3687 = vmatprep.mubr.msk.bf16.mxu1 %vm4110_vm14, %v4109_v47  ;;  %v3076_v13 = vpack.c.b16 %v5098_v57, %v5098_v57 }
 0x305   :  { %3673 = vmatprep.subr.bf16.mxu1 %v4109_v47 }
 0x308   :  { %3674 = vmatpush3.bf16.msra.mxu1 %v4018_v38 }
 0x309   :  { %3675 = vmatprep.subr.bf16.mxu1 %v4109_v47 }
 0x30c   :  { %3676 = vmatpush3.bf16.msra.mxu1 %v4019_v20 }
 0x30d   :  { %3677 = vmatprep.subr.bf16.mxu1 %v4109_v47 }
 0x310   :  { %3678 = vmatpush3.bf16.msra.mxu1 %v4020_v37 }
 0x311   :  { %3679 = vmatprep.subr.bf16.mxu1 %v4109_v47 }
 0x314   :  { %3680 = vmatpush3.bf16.msra.mxu1 %v4021_v35 }
 0x315   :  { %3681 = vmatprep.subr.bf16.mxu1 %v4109_v47 }
 0x318   :  { %3682 = vmatpush3.bf16.msra.mxu1 %v4022_v52 }
 0x319   :  { %3683 = vmatprep.subr.bf16.mxu1 %v4109_v47 }
 0x31c   :  { %3684 = vmatpush3.bf16.msra.mxu1 %v4023_v49 }
 0x31d   :  { %3685 = vmatprep.subr.bf16.mxu1 %v4109_v47 }
 0x320   :  { %3686 = vmatpush3.bf16.msra.mxu1 %v4024_v59 }
 0x321   :  { %3691 = vmatprep.subr.bf16.mxu1 %v4109_v47 }
 0x323   :  { %3688 = vmatmul.mubr.bf16.vlgmr.msra.gmra.mrb[28].mxu1 %v2801_v32 }
 0x324   :  { %3692 = vmatpush3.bf16.msra.mxu1 %v4025_v18  ;;  %3707 = vmatprep.mubr.msk.bf16.mxu1 %vm4110_vm14, %v4109_v47 }
 0x325   :  { %3693 = vmatprep.subr.bf16.mxu1 %v4109_v47 }
 0x328   :  { %3694 = vmatpush3.bf16.msra.mxu1 %v4026_v62 }
 0x329   :  { %3695 = vmatprep.subr.bf16.mxu1 %v4109_v47 }
 0x32c   :  { %3696 = vmatpush3.bf16.msra.mxu1 %v4027_v4 }
 0x32d   :  { %3697 = vmatprep.subr.bf16.mxu1 %v4109_v47 }
 0x330   :  { %3698 = vmatpush3.bf16.msra.mxu1 %v4028_v7 }
 0x331   :  { %3699 = vmatprep.subr.bf16.mxu1 %v4109_v47 }
 0x334   :  { %3700 = vmatpush3.bf16.msra.mxu1 %v4029_v6 }
 0x335   :  { %3701 = vmatprep.subr.bf16.mxu1 %v4109_v47 }
 0x338   :  { %3702 = vmatpush3.bf16.msra.mxu1 %v4030_v50 }
 0x339   :  { %3703 = vmatprep.subr.bf16.mxu1 %v4109_v47 }
 0x33c   :  { %3704 = vmatpush3.bf16.msra.mxu1 %v4031_v3 }
 0x33d   :  { %3705 = vmatprep.subr.bf16.mxu1 %v4109_v47 }
 0x340   :  { %3706 = vmatpush3.bf16.msra.mxu1 %v4032_v11 }
 0x341   :  { %3711 = vmatprep.subr.bf16.mxu1 %v4109_v47 }
 0x343   :  { %3708 = vmatmul.mubr.bf16.vlgmr.msra.gmra.mrb[32].mxu1 %v2938_v12 }
 0x344   :  { %3712 = vmatpush3.bf16.msra.mxu1 %v4033_v31  ;;  %3727 = vmatprep.mubr.msk.bf16.mxu1 %vm4110_vm14, %v4109_v47 }
 0x345   :  { %3713 = vmatprep.subr.bf16.mxu1 %v4109_v47 }
 0x348   :  { %3714 = vmatpush3.bf16.msra.mxu1 %v4034_v36 }
 0x349   :  { %3715 = vmatprep.subr.bf16.mxu1 %v4109_v47 }
 0x34c   :  { %3716 = vmatpush3.bf16.msra.mxu1 %v4035_v58 }
 0x34d   :  { %3717 = vmatprep.subr.bf16.mxu1 %v4109_v47 }
 0x350   :  { %3718 = vmatpush3.bf16.msra.mxu1 %v4036_v41 }
 0x351   :  { %3719 = vmatprep.subr.bf16.mxu1 %v4109_v47 }
 0x354   :  { %3720 = vmatpush3.bf16.msra.mxu1 %v4037_v23 }
 0x355   :  { %3721 = vmatprep.subr.bf16.mxu1 %v4109_v47 }
 0x358   :  { %3722 = vmatpush3.bf16.msra.mxu1 %v4038_v2 }
 0x359   :  { %3723 = vmatprep.subr.bf16.mxu1 %v4109_v47 }
 0x35c   :  { %3724 = vmatpush3.bf16.msra.mxu1 %v4039_v63 }
 0x35d   :  { %3725 = vmatprep.subr.bf16.mxu1 %v4109_v47 }
 0x360   :  { %3726 = vmatpush3.bf16.msra.mxu1 %v4040_v56 }
 0x361   :  { %3731 = vmatprep.subr.bf16.mxu1 %v4109_v47 }
 0x363   :  { %3728 = vmatmul.mubr.bf16.vlgmr.msra.gmra.mrb[36].mxu1 %v3076_v13 }
 0x364   :  { %3747 = vmatprep.mubr.msk.bf16.mxu1 %vm4110_vm14, %v4109_v47  ;;  %3732 = vmatpush3.bf16.msra.mxu1 %v4041_v24 }
 0x365   :  { %3733 = vmatprep.subr.bf16.mxu1 %v4109_v47 }
 0x368   :  { %3734 = vmatpush3.bf16.msra.mxu1 %v4042_v8 }
 0x369   :  { %3735 = vmatprep.subr.bf16.mxu1 %v4109_v47 }
 0x36c   :  { %3736 = vmatpush3.bf16.msra.mxu1 %v4043_v55 }
 0x36d   :  { %3737 = vmatprep.subr.bf16.mxu1 %v4109_v47 }
 0x370   :  { %3738 = vmatpush3.bf16.msra.mxu1 %v4044_v19 }
 0x371   :  { %3739 = vmatprep.subr.bf16.mxu1 %v4109_v47 }
 0x374   :  { %3740 = vmatpush3.bf16.msra.mxu1 %v4045_v28 }
 0x375   :  { %3741 = vmatprep.subr.bf16.mxu1 %v4109_v47 }
 0x378   :  { %3742 = vmatpush3.bf16.msra.mxu1 %v4046_v22 }
 0x379   :  { %3743 = vmatprep.subr.bf16.mxu1 %v4109_v47 }
 0x37c   :  { %3744 = vmatpush3.bf16.msra.mxu1 %v4047_v16 }
 0x37d   :  { %3745 = vmatprep.subr.bf16.mxu1 %v4109_v47  ;;  %v3576_v47 = vld [vmem:[%s5181_s7] ss:$0 sm:$0xff] }
 0x380   :  { %3746 = vmatpush3.bf16.msra.mxu1 %v4048_v27 }
 0x3d6   :  { %v2765_v43 = vpop.f32.mrb[24].mxu1 }
 0x3d7   :  { %v3669_v26 = vpop.f32.mrb[25].mxu1 }
 0x3d8   :  { %v2768_v53 = vpop.f32.mrb[26].mxu1 }
 0x3d9   :  { %v3670_v39 = vpop.f32.mrb[27].mxu1 }
 0x3f6   :  { %v2885_v17 = vpop.f32.mrb[28].mxu1 }
 0x3f7   :  { %v2886_v21 = vadd.f32 %v2885_v17, %v2765_v43  ;;  %v3689_v61 = vpop.f32.mrb[29].mxu1 }
 0x3f8   :  { %v2888_v10 = vpop.f32.mrb[30].mxu1 }
 0x3f9   :  { %v3690_v1 = vpop.f32.mrb[31].mxu1 }
 0x416   :  { %v3022_v0 = vpop.f32.mrb[32].mxu1 }
 0x417   :  { %v3028_v51 = vadd.f32 %v3022_v0, %v2886_v21  ;;  %v3709_v34 = vpop.f32.mrb[33].mxu1 }
 0x418   :  { %v3025_v25 = vpop.f32.mrb[34].mxu1 }
 0x419   :  { %v3710_v29 = vpop.f32.mrb[35].mxu1 }
 0x436   :  { %v3160_v45 = vpop.f32.mrb[36].mxu1 }
 0x437   :  { %v3166_v44 = vadd.f32 %v3160_v45, %v3028_v51  ;;  %v3729_v9 = vpop.f32.mrb[37].mxu1 }
 0x438   :  { %v3163_v5 = vpop.f32.mrb[38].mxu1 }
 0x439   :  { %v3174_v48 = vadd.f32 %v3576_v47, %v3166_v44  ;;  %v3730_v54 = vpop.f32.mrb[39].mxu1 }
 0x43b   :  { %v3175_v42 = vmax.f32 %v3174_v48, 0.0 }
 0x43d   :  { %v3176_v33 = vpack.c.bf16 %v3175_v42, %v3175_v42 }
 0x43f   :  { %3748 = vmatmul.mubr.bf16.vlgmr.msra.gmra.mrb[40].mxu1 %v3176_v33 }
 0x512   :  { %v3282_v40 = vpop.f32.mrb[40].mxu1 }
 0x513   :  { %v3283_v60 = vadd.f32 %v3577_v30, %v3282_v40  ;;  %v3749_v14 = vpop.f32.mrb[41].mxu1 }
 0x514   :  { %v3285_v15 = vpop.f32.mrb[42].mxu1 }
 0x515   :  { %3288 = vmax.xlane.f32.xlu0 %v3283_v60  ;;  %v3750_v46 = vpop.f32.mrb[43].mxu1 }
 0x5a2   :  { %v3289_v57 = vpop.xlane.xlu0 %3288 }
 0x5a3   :  { %v3290_v38 = vsub.f32 %v3283_v60, %v3289_v57 }
 0x5a5   :  { %v3291_v20 = vmul.f32 1.442695, %v3290_v38 }
 0x5a7   :  { %4049 = vpow2.f32 %v3291_v20 }
 0x5b1   :  { %v4050_v37 = vpop.eup %4049 }
 0x5b2   :  { %3293 = vadd.xlane.f32.xlu0 %v4050_v37 }
 0x63f   :  { %v3294_v35 = vpop.xlane.xlu0 %3293 }
 0x640   :  { %4051 = vlog2.f32 %v3294_v35 }
 0x64a   :  { %v4052_v52 = vpop.eup %4051 }
 0x64b   :  { %v3296_v49 = vmul.f32 0.6931472, %v4052_v52 }
 0x64d   :  { %v3297_v59 = vadd.f32 %v3296_v49, %v3289_v57 }
 0x64f   :  { %v3298_v18 = vsub.f32 %v3283_v60, %v3297_v59 }
 0x651   :  { %3299 = vst [vmem:[%s5184_s10] sm:$0xff] %v3298_v18 }
 0x652   :  { %3304 = vsyncpa [#allocation3], 1 }
 0x653   :  { %3305 = vsyncpa [#allocation5], 1 }

</bundles_post_ra>
